<compile_context>
chip_gen: v7x
topology: tpu7x:2x2x1
jax: 0.10.0
libtpu: 0.0.40
codegen_flags: <defaults>
</compile_context>

<pallas_src>
import functools

import jax
import jax.numpy as jnp
from jax import lax
from jax.experimental import pallas as pl
from jax.experimental.pallas import tpu as pltpu


def _make_divisible(ch, divisor=8, min_ch=None):
    if min_ch is None:
        min_ch = divisor
    new_ch = max(min_ch, int(ch + divisor / 2) // divisor * divisor)
    if new_ch < 0.9 * ch:
        new_ch += divisor
    return new_ch


def _hardswish(x):
    return x * jnp.clip(x + 3.0, 0.0, 6.0) * (1.0 / 6.0)


def _hardsigmoid(x):
    return jnp.clip(x + 3.0, 0.0, 6.0) * (1.0 / 6.0)


def _inverted_residual_kernel(x_ref, yy_ref, xx_ref, wexp_ref, wdw_ref,
                              wfc1_ref, wfc2_ref, wproj_ref,
                              bcexp_ref, bfc1_ref, b3_ref, out_ref,
                              *, H, W, n_grp):
    """One grid step: a (n_grp*H*W, pack*C) slab; `pack` images share the lane axis."""
    HW = H * W
    M = n_grp * HW
    Cexp = wexp_ref.shape[1]                                  # packed expanded channels

    def mxu(a, w):
        # cast activations to the weight dtype (bf16 by default), accumulate in f32
        return jnp.dot(a.astype(w.dtype), w, preferred_element_type=jnp.float32)

    x = x_ref[...]                                            # (M, pack*Cin)

    # ---- 1x1 expand conv (BN scale folded into block-diag w_exp) + bias + hardswish ----
    h = _hardswish(mxu(x, wexp_ref[...]) + bcexp_ref[0:1, :])  # (M, Cexp) f32

    # ---- 3x3 depthwise conv, stride 1, SAME padding ----
    # Image groups are stacked on the flat sublane axis; a sublane roll by oy*W + ox
    # reaches every in-bounds neighbour (identical for all lane halves). Rows whose
    # source pixel lies outside their own image (incl. cross-image wrap-around) are
    # exactly the rows removed by the y/x boundary masks below. yy/xx are precomputed
    # host-side, so there is no per-step div/mod by W here.
    yy = yy_ref[...]                                          # (M, 1) int32
    xx = xx_ref[...]
    y_ge1 = yy >= 1
    y_leH = yy <= H - 2
    x_ge1 = xx >= 1
    x_leW = xx <= W - 2
    wdw = wdw_ref[...]                                        # (9, Cexp), loaded once
    acc = jnp.zeros_like(h)
    # 9-tap loop is fully unrolled at trace time (scheduler sees the whole stencil).
    for k in range(9):
        oy, ox = k // 3 - 1, k % 3 - 1
        s = oy * W + ox                                       # flat shift
        tap = h if s == 0 else pltpu.roll(h, (-s) % M, axis=0)   # XLU sublane rotate
        valid = None
        if oy == -1:
            valid = y_ge1
        elif oy == 1:
            valid = y_leH
        if ox == -1:
            valid = x_ge1 if valid is None else valid & x_ge1
        elif ox == 1:
            valid = x_leW if valid is None else valid & x_leW
        if valid is not None:
            tap = jnp.where(valid, tap, 0.0)
        acc = acc + tap * wdw[k:k + 1, :]
    d = _hardswish(acc + bcexp_ref[1:2, :])                   # (M, Cexp) f32

    # ---- Squeeze-Excitation (per image group; HW multiple of 8 keeps reshape cheap) ----
    d3 = d.reshape(n_grp, HW, Cexp)
    pooled = jnp.mean(d3, axis=1)                             # (n_grp, Cexp)
    se = jnp.maximum(mxu(pooled, wfc1_ref[...]) + bfc1_ref[...], 0.0)
    se = _hardsigmoid(mxu(se, wfc2_ref[...]) + bcexp_ref[2:3, :])   # (n_grp, Cexp)

    # ---- 1x1 project conv with SE folded into per-group weights ----
    # o[g,h,:] = sum_c d[g,h,c] * se[g,c] * w_proj[c,:]  ->  scale w_proj rows per group
    # and run a batched MXU matmul; removes the (M, Cexp) elementwise SE multiply (VALU).
    wp = wproj_ref[...]                                       # (Cexp, pack*Cout)
    wp_g = (se[:, :, None] * wp[None, :, :]).astype(wp.dtype)  # (n_grp, Cexp, pack*Cout)
    o3 = jnp.einsum('ghc,gcd->ghd', d3.astype(wp.dtype), wp_g,
                    preferred_element_type=jnp.float32)
    o = o3.reshape(M, wp.shape[1]) + b3_ref[...]
    o = o + x.astype(jnp.float32)                             # residual (stride==1, Cin==Cout)
    out_ref[...] = o.astype(out_ref.dtype)


def inverted_residual_pallas(x_nchw, params, *, block_groups=None,
                             use_bf16_matmul=True, out_dtype=jnp.float32):
    """Fused InvertedResidual forward (expand -> dw3x3 -> SE -> project + residual), eval-mode BN."""
    B, Cin, H, W = x_nchw.shape
    HW = H * W
    Cexp = params['w_exp'].shape[1]
    Cout = params['w_proj'].shape[1]

    # ---- lane packing factor: fill the 128 vector lanes with `pack` images' channels ----
    pack = max(1, min(B, 128 // Cexp)) if Cexp <= 128 else 1
    while B % pack:
        pack -= 1
    B_grp = B // pack
    cin2, cexp2, cout2 = pack * Cin, pack * Cexp, pack * Cout

    # NCHW -> packed (B_grp*HW, pack*Cin): channels of `pack` images side-by-side on lanes,
    # group*spatial stacked on sublanes.
    x_nhwc = jnp.transpose(x_nchw, (0, 2, 3, 1))
    x_p = x_nhwc.reshape(B_grp, pack, HW, Cin).transpose(0, 2, 1, 3).reshape(B_grp * HW, cin2)

    # ---- fold eval-mode BN scales into conv weights; build block-diagonal packed weights ----
    def bdiag(w):
        return jnp.kron(jnp.eye(pack, dtype=w.dtype), w) if pack > 1 else w

    w_exp = bdiag(params['w_exp'] * params['s1'])                    # (pack*Cin,  pack*Cexp)
    w_dw = jnp.tile(params['w_dw'] * params['s2'], (1, pack))        # (9, pack*Cexp)
    w_proj = bdiag(params['w_proj'] * params['s3'])                  # (pack*Cexp, pack*Cout)
    w_fc1 = bdiag(params['w_fc1'])                                   # (pack*Cexp, pack*Csq)
    w_fc2 = bdiag(params['w_fc2'])                                   # (pack*Csq,  pack*Cexp)
    b_cexp = jnp.tile(jnp.concatenate([params['b1'], params['b2'], params['b_fc2']], axis=0),
                      (1, pack))                                     # (3, pack*Cexp)
    b_fc1 = jnp.tile(params['b_fc1'], (1, pack))                     # (1, pack*Csq)
    b3 = jnp.tile(params['b3'], (1, pack))                           # (1, pack*Cout)

    if use_bf16_matmul:
        # bf16 MXU operands on all generations (v5e/v6e/v7x MXUs are bf16-native); the
        # depthwise + elementwise math stays f32. The residual uses the bf16-quantized x.
        x_p = x_p.astype(jnp.bfloat16)
        w_exp, w_proj = w_exp.astype(jnp.bfloat16), w_proj.astype(jnp.bfloat16)
        w_fc1, w_fc2 = w_fc1.astype(jnp.bfloat16), w_fc2.astype(jnp.bfloat16)

    # ---- grid sizing: big M to amortize per-step overhead, but >=2 steps for v7x's 2 TCs ----
    if block_groups is None:
        gpb = max(1, min(B_grp, 1024 // max(HW, 1)))   # target ~1024 MXU/VPU rows per step
        if B_grp >= 2:
            gpb = min(gpb, B_grp // 2)                 # keep >=2 'parallel' steps (v7x megacore)
        while B_grp % gpb:
            gpb -= 1
    else:
        gpb = block_groups
        assert B_grp % gpb == 0
    n_blk = B_grp // gpb
    M = gpb * HW
    if gpb != B_grp:
        need = 16 if use_bf16_matmul else 8
        assert M % need == 0, f"block rows {M} must be a multiple of {need}"

    # per-row spatial coordinates (hoisted out of the kernel; no per-step div/mod by W)
    yy = jnp.tile(jnp.repeat(jnp.arange(H, dtype=jnp.int32), W), gpb).reshape(M, 1)
    xx = jnp.tile(jnp.tile(jnp.arange(W, dtype=jnp.int32), H), gpb).reshape(M, 1)

    weights = [w_exp, w_dw, w_fc1, w_fc2, w_proj, b_cexp, b_fc1, b3]

    # explicit VMEM budget (v7x has 64 MiB physical / 32 MiB scoped default)
    param_bytes = sum(int(a.size) * a.dtype.itemsize for a in weights) + 2 * M * 4
    block_bytes = M * cin2 * x_p.dtype.itemsize + M * cout2 * jnp.dtype(out_dtype).itemsize
    temp_bytes = 12 * M * cexp2 * 4                    # h / acc / tap / d / o f32 temporaries
    vmem_limit = int(min(max(2 * (2 * block_bytes + param_bytes) + temp_bytes,
                             32 * 2 ** 20), 48 * 2 ** 20))

    def rep(arr):  # replicated parameter: constant index_map -> stays VMEM-resident
        return pl.BlockSpec(arr.shape, lambda i: (0, 0))

    out = pl.pallas_call(
        functools.partial(_inverted_residual_kernel, H=H, W=W, n_grp=gpb),
        out_shape=jax.ShapeDtypeStruct((B_grp * HW, cout2), out_dtype),
        grid=(n_blk,),
        in_specs=[pl.BlockSpec((M, cin2), lambda i: (i, 0)), rep(yy), rep(xx)]
                 + [rep(w) for w in weights],
        out_specs=pl.BlockSpec((M, cout2), lambda i: (i, 0)),
        compiler_params=pltpu.CompilerParams(
            dimension_semantics=("parallel",),
            vmem_limit_bytes=vmem_limit),
    )(x_p, yy, xx, *weights)

    # unpack lanes back to NCHW
    o = out.astype(jnp.float32).reshape(B_grp, HW, pack, Cout).transpose(0, 2, 1, 3)
    return jnp.transpose(o.reshape(B, H, W, Cout), (0, 3, 1, 2))


# ---------------- pure-JAX reference (for correctness check, unfolded params) ----------------
def inverted_residual_ref(x_nchw, p):
    hp = lax.Precision.HIGHEST
    x = jnp.transpose(x_nchw, (0, 2, 3, 1))                  # NHWC
    Cexp = p['w_exp'].shape[1]
    h = jnp.einsum('bhwc,cd->bhwd', x, p['w_exp'], precision=hp) * p['s1'][0] + p['b1'][0]
    h = _hardswish(h)
    wdw = p['w_dw'].reshape(3, 3, 1, Cexp)
    d = lax.conv_general_dilated(h, wdw, (1, 1), 'SAME',
                                 dimension_numbers=('NHWC', 'HWIO', 'NHWC'),
                                 feature_group_count=Cexp, precision=hp)
    d = _hardswish(d * p['s2'][0] + p['b2'][0])
    pooled = jnp.mean(d, axis=(1, 2))
    se = jnp.maximum(jnp.dot(pooled, p['w_fc1'], precision=hp) + p['b_fc1'][0], 0.0)
    se = _hardsigmoid(jnp.dot(se, p['w_fc2'], precision=hp) + p['b_fc2'][0])
    d = d * se[:, None, None, :]
    o = jnp.einsum('bhwc,cd->bhwd', d, p['w_proj'], precision=hp) * p['s3'][0] + p['b3'][0]
    o = o + x
    return jnp.transpose(o, (0, 3, 1, 2))


# ---------------- deterministic parameter init (synthetic, no checkpoint) ----------------
def init_params(key, cin, cexp, cout, csq, eps=1e-5):
    keys = iter(jax.random.split(key, 32))

    def u(shape, lo, hi):
        return jax.random.uniform(next(keys), shape, jnp.float32, lo, hi)

    def bn_fold(c):  # eval-mode BatchNorm folded into affine scale/bias
        gamma = u((c,), 0.5, 1.5)
        beta = u((c,), -0.1, 0.1)
        mean = u((c,), -0.1, 0.1)
        var = u((c,), 0.5, 1.5)
        scale = gamma / jnp.sqrt(var + eps)
        bias = beta - mean * scale
        return scale[None, :], bias[None, :]

    w_exp = u((cin, cexp), -0.3, 0.3)        # Conv2d(cin, cexp, 1, bias=False)
    s1, b1 = bn_fold(cexp)
    w_dw = u((9, cexp), -0.3, 0.3)           # depthwise Conv2d(cexp, cexp, 3, groups=cexp)
    s2, b2 = bn_fold(cexp)
    w_fc1 = u((cexp, csq), -0.3, 0.3)        # SE fc1 (1x1 conv, with bias)
    b_fc1 = u((1, csq), -0.1, 0.1)
    w_fc2 = u((csq, cexp), -0.3, 0.3)        # SE fc2 (1x1 conv, with bias)
    b_fc2 = u((1, cexp), -0.1, 0.1)
    w_proj = u((cexp, cout), -0.3, 0.3)      # Conv2d(cexp, cout, 1, bias=False)
    s3, b3 = bn_fold(cout)
    return dict(w_exp=w_exp, s1=s1, b1=b1, w_dw=w_dw, s2=s2, b2=b2,
                w_fc1=w_fc1, b_fc1=b_fc1, w_fc2=w_fc2, b_fc2=b_fc2,
                w_proj=w_proj, s3=s3, b3=b3)


if __name__ == "__main__":
    key = jax.random.PRNGKey(0)
    # InvertedResidualConfig(16, 3, 64, 16, use_se=True, 'HS', stride=1, width_multi=1.0)
    Cin, Cexp, Cout = 16, 64, 16
    Csq = _make_divisible(Cexp // 4, 8)      # 16
    B, H, W = 4, 8, 8                        # B=4 -> 2 lane-packed image pairs -> grid of 2

    kx, kp = jax.random.split(key)
    x = jax.random.normal(kx, (B, Cin, H, W), jnp.float32)   # NCHW, like PyTorch
    params = init_params(kp, Cin, Cexp, Cout, Csq)

    ref = inverted_residual_ref(x, params)

    # f32 MXU path: tight numerical check
    out_f32 = jax.block_until_ready(
        inverted_residual_pallas(x, params, use_bf16_matmul=False))
    assert out_f32.shape == (B, Cout, H, W)
    err = float(jnp.max(jnp.abs(out_f32 - ref)))
    if err > 2e-3:
        raise AssertionError(f"f32 Pallas kernel mismatch vs reference: max abs err = {err}")

    # default path: bf16 MXU operands, f32 accumulation / elementwise (all TPU generations)
    out = jax.block_until_ready(inverted_residual_pallas(x, params))
    assert out.shape == (B, Cout, H, W)
    err_bf16 = float(jnp.max(jnp.abs(out - ref)))
    tol_bf16 = 6e-2 * max(1.0, float(jnp.max(jnp.abs(ref)))) + 1e-2
    if err_bf16 > tol_bf16:
        raise AssertionError(
            f"bf16 Pallas kernel mismatch vs reference: max abs err = {err_bf16}")

    print("KERNEL_OK")
</pallas_src>

<mosaic_0001>
module attributes {stable_mosaic.version = 11 : i64} {
  func.func @_inverted_residual_kernel(%arg0: i32, %arg1: memref<64x32xf32, #tpu.memory_space<vmem>>, %arg2: memref<64x1xi32, #tpu.memory_space<vmem>>, %arg3: memref<64x1xi32, #tpu.memory_space<vmem>>, %arg4: memref<32x128xf32, #tpu.memory_space<vmem>>, %arg5: memref<9x128xf32, #tpu.memory_space<vmem>>, %arg6: memref<128x32xf32, #tpu.memory_space<vmem>>, %arg7: memref<32x128xf32, #tpu.memory_space<vmem>>, %arg8: memref<128x32xf32, #tpu.memory_space<vmem>>, %arg9: memref<3x128xf32, #tpu.memory_space<vmem>>, %arg10: memref<1x32xf32, #tpu.memory_space<vmem>>, %arg11: memref<1x32xf32, #tpu.memory_space<vmem>>, %arg12: memref<64x32xf32, #tpu.memory_space<vmem>>) attributes {dimension_semantics = [#tpu.dimension_semantics<parallel>], iteration_bounds = array<i64: 2>, scalar_prefetch = 0 : i64, scratch_operands = 0 : i64, tpu.core_type = #tpu.core_type<tc>, window_params = [{transform_indices = @transform_0, window_bounds = array<i64: 64, 32>}, {pipeline_mode = #tpu.pipeline_mode<synchronous>, transform_indices = @transform_1, window_bounds = array<i64: 64, 1>}, {pipeline_mode = #tpu.pipeline_mode<synchronous>, transform_indices = @transform_2, window_bounds = array<i64: 64, 1>}, {pipeline_mode = #tpu.pipeline_mode<synchronous>, transform_indices = @transform_3, window_bounds = array<i64: 32, 128>}, {pipeline_mode = #tpu.pipeline_mode<synchronous>, transform_indices = @transform_4, window_bounds = array<i64: 9, 128>}, {pipeline_mode = #tpu.pipeline_mode<synchronous>, transform_indices = @transform_5, window_bounds = array<i64: 128, 32>}, {pipeline_mode = #tpu.pipeline_mode<synchronous>, transform_indices = @transform_6, window_bounds = array<i64: 32, 128>}, {pipeline_mode = #tpu.pipeline_mode<synchronous>, transform_indices = @transform_7, window_bounds = array<i64: 128, 32>}, {pipeline_mode = #tpu.pipeline_mode<synchronous>, transform_indices = @transform_8, window_bounds = array<i64: 3, 128>}, {pipeline_mode = #tpu.pipeline_mode<synchronous>, transform_indices = @transform_9, window_bounds = array<i64: 1, 32>}, {pipeline_mode = #tpu.pipeline_mode<synchronous>, transform_indices = @transform_10, window_bounds = array<i64: 1, 32>}, {transform_indices = @transform_11, window_bounds = array<i64: 64, 32>}]} {
    %c0 = arith.constant 0 : index
    %c0_0 = arith.constant 0 : index
    %0 = vector.load %arg1[%c0, %c0_0] : memref<64x32xf32, #tpu.memory_space<vmem>>, vector<64x32xf32>
    %c0_1 = arith.constant 0 : index
    %c0_2 = arith.constant 0 : index
    %1 = vector.load %arg4[%c0_1, %c0_2] : memref<32x128xf32, #tpu.memory_space<vmem>>, vector<32x128xf32>
    %cst = arith.constant dense<0.000000e+00> : vector<64x128xf32>
    %2 = tpu.matmul %0, %1, %cst {dimension_numbers = #tpu.dot_dimension_numbers<[1], [0], [0], [1], [0, 0, 1, 1], [], []>} : vector<64x32xf32>, vector<32x128xf32>, vector<64x128xf32> -> vector<64x128xf32>
    %c0_3 = arith.constant 0 : index
    %c0_4 = arith.constant 0 : index
    %3 = vector.load %arg9[%c0_3, %c0_4] : memref<3x128xf32, #tpu.memory_space<vmem>>, vector<1x128xf32>
    %4 = vector.broadcast %3 : vector<1x128xf32> to vector<64x128xf32>
    %5 = arith.addf %2, %4 : vector<64x128xf32>
    %cst_5 = arith.constant 3.000000e+00 : f32
    %6 = vector.broadcast %cst_5 : f32 to vector<64x128xf32>
    %7 = arith.addf %5, %6 : vector<64x128xf32>
    %cst_6 = arith.constant 0.000000e+00 : f32
    %cst_7 = arith.constant 6.000000e+00 : f32
    %8 = vector.broadcast %cst_6 : f32 to vector<64x128xf32>
    %9 = arith.maximumf %8, %7 : vector<64x128xf32>
    %10 = vector.broadcast %cst_7 : f32 to vector<64x128xf32>
    %11 = arith.minimumf %10, %9 : vector<64x128xf32>
    %12 = arith.mulf %5, %11 : vector<64x128xf32>
    %cst_8 = arith.constant 0.166666672 : f32
    %13 = vector.broadcast %cst_8 : f32 to vector<64x128xf32>
    %14 = arith.mulf %12, %13 : vector<64x128xf32>
    %c0_9 = arith.constant 0 : index
    %c0_10 = arith.constant 0 : index
    %15 = vector.load %arg2[%c0_9, %c0_10] : memref<64x1xi32, #tpu.memory_space<vmem>>, vector<64x1xi32>
    %c0_11 = arith.constant 0 : index
    %c0_12 = arith.constant 0 : index
    %16 = vector.load %arg3[%c0_11, %c0_12] : memref<64x1xi32, #tpu.memory_space<vmem>>, vector<64x1xi32>
    %c1_i32 = arith.constant 1 : i32
    %17 = vector.broadcast %c1_i32 : i32 to vector<64x1xi32>
    %18 = arith.cmpi sge, %15, %17 : vector<64x1xi32>
    %c6_i32 = arith.constant 6 : i32
    %19 = vector.broadcast %c6_i32 : i32 to vector<64x1xi32>
    %20 = arith.cmpi sle, %15, %19 : vector<64x1xi32>
    %c1_i32_13 = arith.constant 1 : i32
    %21 = vector.broadcast %c1_i32_13 : i32 to vector<64x1xi32>
    %22 = arith.cmpi sge, %16, %21 : vector<64x1xi32>
    %c6_i32_14 = arith.constant 6 : i32
    %23 = vector.broadcast %c6_i32_14 : i32 to vector<64x1xi32>
    %24 = arith.cmpi sle, %16, %23 : vector<64x1xi32>
    %c0_15 = arith.constant 0 : index
    %c0_16 = arith.constant 0 : index
    %25 = vector.load %arg5[%c0_15, %c0_16] : memref<9x128xf32, #tpu.memory_space<vmem>>, vector<9x128xf32>
    %cst_17 = arith.constant 0.000000e+00 : f32
    %26 = vector.broadcast %cst_17 : f32 to vector<64x128xf32>
    %c9_i32 = arith.constant 9 : i32
    %27 = tpu.dynamic_rotate %14 by %c9_i32 dim 0 : vector<64x128xf32>, i32 -> vector<64x128xf32>
    %28 = arith.andi %18, %22 : vector<64x1xi1>
    %cst_18 = arith.constant 0.000000e+00 : f32
    %29 = vector.shape_cast %28 : vector<64x1xi1> to vector<64x1xi1>
    %30 = vector.broadcast %29 : vector<64x1xi1> to vector<64x128xi1>
    %31 = vector.broadcast %cst_18 : f32 to vector<64x128xf32>
    %32 = arith.select %30, %27, %31 : vector<64x128xi1>, vector<64x128xf32>
    %33 = vector.extract_strided_slice %25 {offsets = [0, 0], sizes = [1, 128], strides = [1, 1]} : vector<9x128xf32> to vector<1x128xf32>
    %34 = vector.broadcast %33 : vector<1x128xf32> to vector<64x128xf32>
    %35 = arith.mulf %32, %34 : vector<64x128xf32>
    %36 = arith.addf %26, %35 : vector<64x128xf32>
    %c8_i32 = arith.constant 8 : i32
    %37 = tpu.dynamic_rotate %14 by %c8_i32 dim 0 : vector<64x128xf32>, i32 -> vector<64x128xf32>
    %cst_19 = arith.constant 0.000000e+00 : f32
    %38 = vector.shape_cast %18 : vector<64x1xi1> to vector<64x1xi1>
    %39 = vector.broadcast %38 : vector<64x1xi1> to vector<64x128xi1>
    %40 = vector.broadcast %cst_19 : f32 to vector<64x128xf32>
    %41 = arith.select %39, %37, %40 : vector<64x128xi1>, vector<64x128xf32>
    %42 = vector.extract_strided_slice %25 {offsets = [1, 0], sizes = [1, 128], strides = [1, 1]} : vector<9x128xf32> to vector<1x128xf32>
    %43 = vector.broadcast %42 : vector<1x128xf32> to vector<64x128xf32>
    %44 = arith.mulf %41, %43 : vector<64x128xf32>
    %45 = arith.addf %36, %44 : vector<64x128xf32>
    %c7_i32 = arith.constant 7 : i32
    %46 = tpu.dynamic_rotate %14 by %c7_i32 dim 0 : vector<64x128xf32>, i32 -> vector<64x128xf32>
    %47 = arith.andi %18, %24 : vector<64x1xi1>
    %cst_20 = arith.constant 0.000000e+00 : f32
    %48 = vector.shape_cast %47 : vector<64x1xi1> to vector<64x1xi1>
    %49 = vector.broadcast %48 : vector<64x1xi1> to vector<64x128xi1>
    %50 = vector.broadcast %cst_20 : f32 to vector<64x128xf32>
    %51 = arith.select %49, %46, %50 : vector<64x128xi1>, vector<64x128xf32>
    %52 = vector.extract_strided_slice %25 {offsets = [2, 0], sizes = [1, 128], strides = [1, 1]} : vector<9x128xf32> to vector<1x128xf32>
    %53 = vector.broadcast %52 : vector<1x128xf32> to vector<64x128xf32>
    %54 = arith.mulf %51, %53 : vector<64x128xf32>
    %55 = arith.addf %45, %54 : vector<64x128xf32>
    %c1_i32_21 = arith.constant 1 : i32
    %56 = tpu.dynamic_rotate %14 by %c1_i32_21 dim 0 : vector<64x128xf32>, i32 -> vector<64x128xf32>
    %cst_22 = arith.constant 0.000000e+00 : f32
    %57 = vector.shape_cast %22 : vector<64x1xi1> to vector<64x1xi1>
    %58 = vector.broadcast %57 : vector<64x1xi1> to vector<64x128xi1>
    %59 = vector.broadcast %cst_22 : f32 to vector<64x128xf32>
    %60 = arith.select %58, %56, %59 : vector<64x128xi1>, vector<64x128xf32>
    %61 = vector.extract_strided_slice %25 {offsets = [3, 0], sizes = [1, 128], strides = [1, 1]} : vector<9x128xf32> to vector<1x128xf32>
    %62 = vector.broadcast %61 : vector<1x128xf32> to vector<64x128xf32>
    %63 = arith.mulf %60, %62 : vector<64x128xf32>
    %64 = arith.addf %55, %63 : vector<64x128xf32>
    %65 = vector.extract_strided_slice %25 {offsets = [4, 0], sizes = [1, 128], strides = [1, 1]} : vector<9x128xf32> to vector<1x128xf32>
    %66 = vector.broadcast %65 : vector<1x128xf32> to vector<64x128xf32>
    %67 = arith.mulf %14, %66 : vector<64x128xf32>
    %68 = arith.addf %64, %67 : vector<64x128xf32>
    %c63_i32 = arith.constant 63 : i32
    %69 = tpu.dynamic_rotate %14 by %c63_i32 dim 0 : vector<64x128xf32>, i32 -> vector<64x128xf32>
    %cst_23 = arith.constant 0.000000e+00 : f32
    %70 = vector.shape_cast %24 : vector<64x1xi1> to vector<64x1xi1>
    %71 = vector.broadcast %70 : vector<64x1xi1> to vector<64x128xi1>
    %72 = vector.broadcast %cst_23 : f32 to vector<64x128xf32>
    %73 = arith.select %71, %69, %72 : vector<64x128xi1>, vector<64x128xf32>
    %74 = vector.extract_strided_slice %25 {offsets = [5, 0], sizes = [1, 128], strides = [1, 1]} : vector<9x128xf32> to vector<1x128xf32>
    %75 = vector.broadcast %74 : vector<1x128xf32> to vector<64x128xf32>
    %76 = arith.mulf %73, %75 : vector<64x128xf32>
    %77 = arith.addf %68, %76 : vector<64x128xf32>
    %c57_i32 = arith.constant 57 : i32
    %78 = tpu.dynamic_rotate %14 by %c57_i32 dim 0 : vector<64x128xf32>, i32 -> vector<64x128xf32>
    %79 = arith.andi %20, %22 : vector<64x1xi1>
    %cst_24 = arith.constant 0.000000e+00 : f32
    %80 = vector.shape_cast %79 : vector<64x1xi1> to vector<64x1xi1>
    %81 = vector.broadcast %80 : vector<64x1xi1> to vector<64x128xi1>
    %82 = vector.broadcast %cst_24 : f32 to vector<64x128xf32>
    %83 = arith.select %81, %78, %82 : vector<64x128xi1>, vector<64x128xf32>
    %84 = vector.extract_strided_slice %25 {offsets = [6, 0], sizes = [1, 128], strides = [1, 1]} : vector<9x128xf32> to vector<1x128xf32>
    %85 = vector.broadcast %84 : vector<1x128xf32> to vector<64x128xf32>
    %86 = arith.mulf %83, %85 : vector<64x128xf32>
    %87 = arith.addf %77, %86 : vector<64x128xf32>
    %c56_i32 = arith.constant 56 : i32
    %88 = tpu.dynamic_rotate %14 by %c56_i32 dim 0 : vector<64x128xf32>, i32 -> vector<64x128xf32>
    %cst_25 = arith.constant 0.000000e+00 : f32
    %89 = vector.shape_cast %20 : vector<64x1xi1> to vector<64x1xi1>
    %90 = vector.broadcast %89 : vector<64x1xi1> to vector<64x128xi1>
    %91 = vector.broadcast %cst_25 : f32 to vector<64x128xf32>
    %92 = arith.select %90, %88, %91 : vector<64x128xi1>, vector<64x128xf32>
    %93 = vector.extract_strided_slice %25 {offsets = [7, 0], sizes = [1, 128], strides = [1, 1]} : vector<9x128xf32> to vector<1x128xf32>
    %94 = vector.broadcast %93 : vector<1x128xf32> to vector<64x128xf32>
    %95 = arith.mulf %92, %94 : vector<64x128xf32>
    %96 = arith.addf %87, %95 : vector<64x128xf32>
    %c55_i32 = arith.constant 55 : i32
    %97 = tpu.dynamic_rotate %14 by %c55_i32 dim 0 : vector<64x128xf32>, i32 -> vector<64x128xf32>
    %98 = arith.andi %20, %24 : vector<64x1xi1>
    %cst_26 = arith.constant 0.000000e+00 : f32
    %99 = vector.shape_cast %98 : vector<64x1xi1> to vector<64x1xi1>
    %100 = vector.broadcast %99 : vector<64x1xi1> to vector<64x128xi1>
    %101 = vector.broadcast %cst_26 : f32 to vector<64x128xf32>
    %102 = arith.select %100, %97, %101 : vector<64x128xi1>, vector<64x128xf32>
    %103 = vector.extract_strided_slice %25 {offsets = [8, 0], sizes = [1, 128], strides = [1, 1]} : vector<9x128xf32> to vector<1x128xf32>
    %104 = vector.broadcast %103 : vector<1x128xf32> to vector<64x128xf32>
    %105 = arith.mulf %102, %104 : vector<64x128xf32>
    %106 = arith.addf %96, %105 : vector<64x128xf32>
    %c1 = arith.constant 1 : index
    %c0_27 = arith.constant 0 : index
    %107 = vector.load %arg9[%c1, %c0_27] : memref<3x128xf32, #tpu.memory_space<vmem>>, vector<1x128xf32>
    %108 = vector.broadcast %107 : vector<1x128xf32> to vector<64x128xf32>
    %109 = arith.addf %106, %108 : vector<64x128xf32>
    %cst_28 = arith.constant 3.000000e+00 : f32
    %110 = vector.broadcast %cst_28 : f32 to vector<64x128xf32>
    %111 = arith.addf %109, %110 : vector<64x128xf32>
    %cst_29 = arith.constant 0.000000e+00 : f32
    %cst_30 = arith.constant 6.000000e+00 : f32
    %112 = vector.broadcast %cst_29 : f32 to vector<64x128xf32>
    %113 = arith.maximumf %112, %111 : vector<64x128xf32>
    %114 = vector.broadcast %cst_30 : f32 to vector<64x128xf32>
    %115 = arith.minimumf %114, %113 : vector<64x128xf32>
    %116 = arith.mulf %109, %115 : vector<64x128xf32>
    %cst_31 = arith.constant 0.166666672 : f32
    %117 = vector.broadcast %cst_31 : f32 to vector<64x128xf32>
    %118 = arith.mulf %116, %117 : vector<64x128xf32>
    %119 = vector.shape_cast %118 : vector<64x128xf32> to vector<1x64x128xf32>
    %cst_32 = arith.constant dense<0.000000e+00> : vector<1x128xf32>
    %120 = vector.multi_reduction <add>, %119, %cst_32 [1] : vector<1x64x128xf32> to vector<1x128xf32>
    %cst_33 = arith.constant 6.400000e+01 : f32
    %121 = vector.broadcast %cst_33 : f32 to vector<1x128xf32>
    %122 = arith.divf %120, %121 : vector<1x128xf32>
    %c0_34 = arith.constant 0 : index
    %c0_35 = arith.constant 0 : index
    %123 = vector.load %arg6[%c0_34, %c0_35] : memref<128x32xf32, #tpu.memory_space<vmem>>, vector<128x32xf32>
    %cst_36 = arith.constant dense<0.000000e+00> : vector<1x32xf32>
    %124 = tpu.matmul %122, %123, %cst_36 {dimension_numbers = #tpu.dot_dimension_numbers<[1], [0], [0], [1], [0, 0, 1, 1], [], []>} : vector<1x128xf32>, vector<128x32xf32>, vector<1x32xf32> -> vector<1x32xf32>
    %c0_37 = arith.constant 0 : index
    %c0_38 = arith.constant 0 : index
    %125 = vector.load %arg10[%c0_37, %c0_38] : memref<1x32xf32, #tpu.memory_space<vmem>>, vector<1x32xf32>
    %126 = arith.addf %124, %125 : vector<1x32xf32>
    %cst_39 = arith.constant 0.000000e+00 : f32
    %127 = vector.broadcast %cst_39 : f32 to vector<1x32xf32>
    %128 = arith.maximumf %126, %127 : vector<1x32xf32>
    %c0_40 = arith.constant 0 : index
    %c0_41 = arith.constant 0 : index
    %129 = vector.load %arg7[%c0_40, %c0_41] : memref<32x128xf32, #tpu.memory_space<vmem>>, vector<32x128xf32>
    %cst_42 = arith.constant dense<0.000000e+00> : vector<1x128xf32>
    %130 = tpu.matmul %128, %129, %cst_42 {dimension_numbers = #tpu.dot_dimension_numbers<[1], [0], [0], [1], [0, 0, 1, 1], [], []>} : vector<1x32xf32>, vector<32x128xf32>, vector<1x128xf32> -> vector<1x128xf32>
    %c2 = arith.constant 2 : index
    %c0_43 = arith.constant 0 : index
    %131 = vector.load %arg9[%c2, %c0_43] : memref<3x128xf32, #tpu.memory_space<vmem>>, vector<1x128xf32>
    %132 = arith.addf %130, %131 : vector<1x128xf32>
    %cst_44 = arith.constant 3.000000e+00 : f32
    %133 = vector.broadcast %cst_44 : f32 to vector<1x128xf32>
    %134 = arith.addf %132, %133 : vector<1x128xf32>
    %cst_45 = arith.constant 0.000000e+00 : f32
    %cst_46 = arith.constant 6.000000e+00 : f32
    %135 = vector.broadcast %cst_45 : f32 to vector<1x128xf32>
    %136 = arith.maximumf %135, %134 : vector<1x128xf32>
    %137 = vector.broadcast %cst_46 : f32 to vector<1x128xf32>
    %138 = arith.minimumf %137, %136 : vector<1x128xf32>
    %cst_47 = arith.constant 0.166666672 : f32
    %139 = vector.broadcast %cst_47 : f32 to vector<1x128xf32>
    %140 = arith.mulf %138, %139 : vector<1x128xf32>
    %c0_48 = arith.constant 0 : index
    %c0_49 = arith.constant 0 : index
    %141 = vector.load %arg8[%c0_48, %c0_49] : memref<128x32xf32, #tpu.memory_space<vmem>>, vector<128x32xf32>
    %142 = vector.shape_cast %140 : vector<1x128xf32> to vector<1x128x1xf32>
    %143 = vector.shape_cast %141 : vector<128x32xf32> to vector<1x128x32xf32>
    %144 = vector.broadcast %142 : vector<1x128x1xf32> to vector<1x128x32xf32>
    %145 = arith.mulf %144, %143 : vector<1x128x32xf32>
    "tpu.trace_start"() <{level = 10 : i32, message = "ghc,gcd->ghd"}> : () -> ()
    %cst_50 = arith.constant dense<0.000000e+00> : vector<1x64x32xf32>
    %146 = tpu.matmul %119, %145, %cst_50 {dimension_numbers = #tpu.dot_dimension_numbers<[2], [1], [1], [2], [0, 0, 0, 1, 1, 2], [0], [0]>} : vector<1x64x128xf32>, vector<1x128x32xf32>, vector<1x64x32xf32> -> vector<1x64x32xf32>
    "tpu.trace_stop"() : () -> ()
    %147 = vector.shape_cast %146 : vector<1x64x32xf32> to vector<64x32xf32>
    %c0_51 = arith.constant 0 : index
    %c0_52 = arith.constant 0 : index
    %148 = vector.load %arg11[%c0_51, %c0_52] : memref<1x32xf32, #tpu.memory_space<vmem>>, vector<1x32xf32>
    %149 = vector.broadcast %148 : vector<1x32xf32> to vector<64x32xf32>
    %150 = arith.addf %147, %149 : vector<64x32xf32>
    %151 = arith.addf %150, %0 : vector<64x32xf32>
    %c0_53 = arith.constant 0 : index
    %c0_54 = arith.constant 0 : index
    %152 = vector.load %arg12[%c0_53, %c0_54] : memref<64x32xf32, #tpu.memory_space<vmem>>, vector<64x32xf32>
    tpu.vector_store %arg12[%c0_53, %c0_54], %151 {strides = array<i32>} : memref<64x32xf32, #tpu.memory_space<vmem>>, vector<64x32xf32>,
    return
  }
  func.func @transform_0(%arg0: i32) -> (i32, i32) {
    %c0_i32 = arith.constant 0 : i32
    %c0_i32_0 = arith.constant 0 : i32
    return %arg0, %c0_i32 : i32, i32
  }
  func.func @transform_1(%arg0: i32) -> (i32, i32) {
    %c0_i32 = arith.constant 0 : i32
    %c0_i32_0 = arith.constant 0 : i32
    %c0_i32_1 = arith.constant 0 : i32
    return %c0_i32, %c0_i32_0 : i32, i32
  }
  func.func @transform_2(%arg0: i32) -> (i32, i32) {
    %c0_i32 = arith.constant 0 : i32
    %c0_i32_0 = arith.constant 0 : i32
    %c0_i32_1 = arith.constant 0 : i32
    return %c0_i32, %c0_i32_0 : i32, i32
  }
  func.func @transform_3(%arg0: i32) -> (i32, i32) {
    %c0_i32 = arith.constant 0 : i32
    %c0_i32_0 = arith.constant 0 : i32
    %c0_i32_1 = arith.constant 0 : i32
    return %c0_i32, %c0_i32_0 : i32, i32
  }
  func.func @transform_4(%arg0: i32) -> (i32, i32) {
    %c0_i32 = arith.constant 0 : i32
    %c0_i32_0 = arith.constant 0 : i32
    %c0_i32_1 = arith.constant 0 : i32
    return %c0_i32, %c0_i32_0 : i32, i32
  }
  func.func @transform_5(%arg0: i32) -> (i32, i32) {
    %c0_i32 = arith.constant 0 : i32
    %c0_i32_0 = arith.constant 0 : i32
    %c0_i32_1 = arith.constant 0 : i32
    return %c0_i32, %c0_i32_0 : i32, i32
  }
  func.func @transform_6(%arg0: i32) -> (i32, i32) {
    %c0_i32 = arith.constant 0 : i32
    %c0_i32_0 = arith.constant 0 : i32
    %c0_i32_1 = arith.constant 0 : i32
    return %c0_i32, %c0_i32_0 : i32, i32
  }
  func.func @transform_7(%arg0: i32) -> (i32, i32) {
    %c0_i32 = arith.constant 0 : i32
    %c0_i32_0 = arith.constant 0 : i32
    %c0_i32_1 = arith.constant 0 : i32
    return %c0_i32, %c0_i32_0 : i32, i32
  }
  func.func @transform_8(%arg0: i32) -> (i32, i32) {
    %c0_i32 = arith.constant 0 : i32
    %c0_i32_0 = arith.constant 0 : i32
    %c0_i32_1 = arith.constant 0 : i32
    return %c0_i32, %c0_i32_0 : i32, i32
  }
  func.func @transform_9(%arg0: i32) -> (i32, i32) {
    %c0_i32 = arith.constant 0 : i32
    %c0_i32_0 = arith.constant 0 : i32
    %c0_i32_1 = arith.constant 0 : i32
    return %c0_i32, %c0_i32_0 : i32, i32
  }
  func.func @transform_10(%arg0: i32) -> (i32, i32) {
    %c0_i32 = arith.constant 0 : i32
    %c0_i32_0 = arith.constant 0 : i32
    %c0_i32_1 = arith.constant 0 : i32
    return %c0_i32, %c0_i32_0 : i32, i32
  }
  func.func @transform_11(%arg0: i32) -> (i32, i32) {
    %c0_i32 = arith.constant 0 : i32
    %c0_i32_0 = arith.constant 0 : i32
    return %arg0, %c0_i32 : i32, i32
  }
}

</mosaic_0001>

<bundles_post_ra>
// kernel: tpu_custom_call.1
= control target key start
LH: loop header
LB: loop body
LE: loop exit
PB: predicated region body
PF: predicated region fallthrough
CT: control target
= control target key end

     0   :  { %s2136_s17 = smov 0   ;;  %s3361_s0 = inlined_call_operand.vmem [shape: f32[128,32], index: 0, kind: input, shape index: {}]   ;;  %s3362_s1 = inlined_call_operand.vmem [shape: s32[64,1], index: 1, kind: input, shape index: {}]   ;;  %s3363_s2 = inlined_call_operand.vmem [shape: s32[64,1], index: 2, kind: input, shape index: {}]   ;;  %s3364_s3 = inlined_call_operand.vmem [shape: f32[32,128], index: 3, kind: input, shape index: {}]   ;;  %s3365_s4 = inlined_call_operand.vmem [shape: f32[9,128], index: 4, kind: input, shape index: {}]   ;;  %s3366_s5 = inlined_call_operand.vmem [shape: f32[128,32], index: 5, kind: input, shape index: {}]   ;;  %s3367_s6 = inlined_call_operand.vmem [shape: f32[32,128], index: 6, kind: input, shape index: {}]   ;;  %s3368_s7 = inlined_call_operand.vmem [shape: f32[128,32], index: 7, kind: input, shape index: {}]   ;;  %s3369_s8 = inlined_call_operand.vmem [shape: f32[3,128], index: 8, kind: input, shape index: {}]   ;;  %s3370_s9 = inlined_call_operand.vmem [shape: f32[1,32], index: 9, kind: input, shape index: {}]   ;;  %s3371_s10 = inlined_call_operand.vmem [shape: f32[1,32], index: 10, kind: input, shape index: {}]   ;;  %s3372_s11 = inlined_call_operand.vmem [shape: f32[128,32], index: 11, kind: output, shape index: {}]  }
   0x1 LB: > { %s1780_s18 = sadd.s32 4294967295, %s2070_s17   ;;  %p1784_p0 = scmp.ge.s32.totalorder %s2070_s17, 1  ;;  %s2070_s17 = sphi %s2136_s17, %s21_s17  }
   0x2   : > { %p338_p1 = scmp.lt.s32.totalorder %s2070_s17, 3 }
   0x4   : > { %p339_p2 = pnand %p1784_p0, %p338_p1 }
   0x6   : > { %342 = sbr.rel (%p339_p2) target bundleno = 1192 (0x4a8), region = 64 }
   0xd   : > { %v2147_v0 = vld [vmem:[%s3362_s1] sm:$0xff]  ;;  %v399_v2 = vld [vmem:[%s3364_s3 + $0x8] sm:$0xff]  ;;  %s1785_s25 = sshll.u32 %s1780_s18, 3  ;;  %v2072_v3 = vmov 0   ;;  %v400_v7 = vld [vmem:[%s3364_s3 + $0x10] sm:$0xff]  ;;  %vm3379_vm8 = vcmask 261120  }
   0xe   : > { %v398_v1 = vld [vmem:[%s3364_s3] sm:$0xff]  ;;  %2054 = vset.pattern.permute.xlu1 %v2072_v3  ;;  %2055 = vset.pattern.permute.xlu0 %v2072_v3  ;;  %vm593_vm0 = vcmp.ge.s32.totalorder %v2147_v0, 1  ;;  %v2166_v6 = vld [vmem:[%s3362_s1 + $0x8] sm:$0xff]  ;;  %p379_p3 = scmp.lt.s32.totalorder %s1785_s25, 15  ;;  %v401_v9 = vld [vmem:[%s3364_s3 + $0x18] sm:$0xff] }
   0xf   : > { %v1972_v4 = vpack.c.bf16 %v399_v2, %v398_v1  ;;  %v2161_v5 = vld [vmem:[%s3363_s2] sm:$0xff]  ;;  %v722_v8 = vsel %vm593_vm0, 1, %v2072_v3  ;;  %vm594_vm2 = vcmp.ge.s32.totalorder %v2166_v6, 1  ;;  %v2182_v10 = vld [vmem:[%s3363_s2 + $0x8] sm:$0xff]  ;;  %v2187_v11 = vld [vmem:[%s3362_s1 + $0x10] sm:$0xff]  ;;  %v1976_v12 = vpack.c.bf16 %v401_v9, %v400_v7 }
  0x10   : > { %vm3373_vm1 = vcmp.ge.s32.totalorder %v2161_v5, 1  ;;  %731 = vperm.xlu1 %2054, %v722_v8   ;;  %vm3383_vm4 = vcmp.ge.s32.totalorder %v2182_v10, 1  ;;  %s3501_s25 = smov (!%p379_p3, %s1785_s25), 15  ;;  %v2199_v13 = vld [vmem:[%s3363_s2 + $0x10] sm:$0xff]  ;;  %v723_v15 = vsel %vm594_vm2, 1, %v2072_v3  ;;  %vm595_vm6 = vcmp.ge.s32.totalorder %v2187_v11, 1 }
  0x11   : > { %1973 = vmatprep.subr.bf16.mxu1 %v1972_v4  ;;  %vm646_vm3 = vmand %vm593_vm0, %vm3373_vm1  ;;  %vm3375_vm7 = vcmp.ge.s32.totalorder %v2199_v13, 1  ;;  %s1786_s22 = sshll.u32 %s3501_s25, 3  ;;  %vm618_vm9 = vcmp.le.s32.totalorder %v2182_v10, 6  ;;  %v724_v18 = vsel %vm595_vm6, 1, %v2072_v3  ;;  %vm617_vm11 = vcmp.le.s32.totalorder %v2161_v5, 6  ;;  %v2235_v20 = vld [vmem:[%s3362_s1 + $0x18] sm:$0xff] }
  0x12   : > { %v654_v14 = vsel %vm646_vm3, 1, %v2072_v3  ;;  %1975 = vmatpush3.bf16.msra.mxu1 %v1972_v4  ;;  %vm647_vm5 = vmand %vm594_vm2, %vm3383_vm4  ;;  %s2218_s26 = scalar_lea.vmem %s3361_s0, %s1786_s22  ;;  %v2245_v22 = vld [vmem:[%s3363_s2 + $0x18] sm:$0xff]  ;;  %vm596_vm14 = vcmp.ge.s32.totalorder %v2235_v20, 1  ;;  %v2268_v28 = vld [vmem:[%s3362_s1 + $0x20] sm:$0xff]  ;;  %v883_v36 = vsel %vm3373_vm1, 1, %v2072_v3  ;;  %v884_v47 = vsel %vm3383_vm4, 1, %v2072_v3  ;;  %s3332_s30 = scalar_lea.vmem %s3372_s11, %s1786_s22 }
  0x13   : > { %663 = vperm.xlu0 %2055, %v654_v14   ;;  %1977 = vmatprep.subr.bf16.mxu1 %v1976_v12  ;;  %v655_v16 = vsel %vm647_vm5, 1, %v2072_v3  ;;  %v390_v17 = vld [vmem:[%s2218_s26] sm:$0xff]  ;;  %vm648_vm10 = vmand %vm595_vm6, %vm3375_vm7  ;;  %v391_v19 = vld [vmem:[%s2218_s26 + $0x8] sm:$0xff]  ;;  %vm3374_vm15 = vcmp.ge.s32.totalorder %v2245_v22, 1  ;;  %v725_v30 = vsel %vm596_vm14, 1, %v2072_v3  ;;  %vm3377_vm3 = vcmp.ge.s32.totalorder %v2268_v28, 1 }
  0x14   : > { %734 = vperm.xlu1 %2054, %v723_v15   ;;  %1870 = vmatprep.mubr.msk.f32.mxu1 %vm3379_vm8, %v390_v17  ;;  %v392_v21 = vld [vmem:[%s2218_s26 + $0x10] sm:$0xff]  ;;  %vm808_vm12 = vmand %vm594_vm2, %vm618_vm9  ;;  %v656_v23 = vsel %vm648_vm10, 1, %v2072_v3  ;;  %v393_v25 = vld [vmem:[%s2218_s26 + $0x18] sm:$0xff]  ;;  %vm3376_vm2 = vcmp.le.s32.totalorder %v2199_v13, 6  ;;  %v971_v1 = vsel %vm617_vm11, 1, %v2072_v3  ;;  %v972_v7 = vsel %vm618_vm9, 1, %v2072_v3 }
  0x15   : > { %vm807_vm13 = vmand %vm593_vm0, %vm617_vm11  ;;  %v816_v24 = vsel %vm808_vm12, 1, %v2072_v3  ;;  %v394_v26 = vld [vmem:[%s2218_s26 + $0x20] sm:$0xff]  ;;  %v395_v31 = vld [vmem:[%s2218_s26 + $0x28] sm:$0xff]  ;;  %vm620_vm12 = vcmp.le.s32.totalorder %v2245_v22, 6 }
  0x16   : > { %1979 = vmatpush3.bf16.msra.mxu1 %v1976_v12  ;;  %v815_v27 = vsel %vm807_vm13, 1, %v2072_v3  ;;  %vm649_vm0 = vmand %vm596_vm14, %vm3374_vm15  ;;  %v2273_v29 = vld [vmem:[%s3363_s2 + $0x20] sm:$0xff]  ;;  %v2284_v32 = vld [vmem:[%s3362_s1 + $0x28] sm:$0xff] }
  0x17   : > { %666 = vperm.xlu0 %2055, %v655_v16   ;;  %v396_v33 = vld [vmem:[%s2218_s26 + $0x30] sm:$0xff]  ;;  %v2290_v34 = vld [vmem:[%s3363_s2 + $0x28] sm:$0xff]  ;;  %v657_v35 = vsel %vm649_vm0, 1, %v2072_v3  ;;  %vm3382_vm5 = vcmp.ge.s32.totalorder %v2273_v29, 1  ;;  %vm809_vm10 = vmand %vm595_vm6, %vm3376_vm2  ;;  %vm598_vm13 = vcmp.ge.s32.totalorder %v2284_v32, 1  ;;  %vm605_vm0 = vcmp.le.s32.totalorder %v2268_v28, 6 }
  0x18   : > { %737 = vperm.xlu1 %2054, %v724_v18   ;;  %v2308_v37 = vld [vmem:[%s3362_s1 + $0x30] sm:$0xff]  ;;  %v397_v38 = vld [vmem:[%s2218_s26 + $0x38] sm:$0xff]  ;;  %vm614_vm1 = vcmp.ge.s32.totalorder %v2290_v34, 1  ;;  %vm606_vm15 = vcmp.le.s32.totalorder %v2284_v32, 6  ;;  %v2318_v39 = vsel %vm605_vm0, 1, %v2072_v3  ;;  %vm650_vm7 = vmand %vm3377_vm3, %vm3382_vm5  ;;  %v817_v42 = vsel %vm809_vm10, 1, %v2072_v3 }
  0x19   : > { %1871 = vmatmul.mubr.msk.f32.vlgmr.msra.gmra.mrb[0].mxu1 %vm3379_vm8, %v391_v19  ;;  %vm3378_vm6 = vcmp.le.s32.totalorder %v2308_v37, 6  ;;  %v2328_v40 = vsel %vm606_vm15, 1, %v2072_v3  ;;  %vm2340_vm2 = vmand %vm596_vm14, %vm620_vm12  ;;  %vm3380_vm3 = vcmp.le.s32.totalorder %v2147_v0, 6  ;;  %v658_v45 = vsel %vm650_vm7, 1, %v2072_v3  ;;  %v2373_v48 = vld [vmem:[%s3363_s2 + $0x30] sm:$0xff]  ;;  %v2493_v14 = vld [vmem:[%s3362_s1 + $0x38] sm:$0xff] }
  0x1a   : > { %1873 = vmatprep.mubr.msk.f32.mxu1 %vm3379_vm8, %v392_v21  ;;  %v2333_v41 = vsel %vm3378_vm6, 1, %v2072_v3  ;;  %vm2350_vm6 = vmand %vm598_vm13, %vm614_vm1  ;;  %vm3381_vm14 = vcmp.le.s32.totalorder %v2166_v6, 6  ;;  %vm3384_vm7 = vcmp.le.s32.totalorder %v2187_v11, 6  ;;  %v818_v51 = vsel %vm2340_vm2, 1, %v2072_v3  ;;  %v2498_v15 = vld [vmem:[%s3363_s2 + $0x38] sm:$0xff] }
  0x1b   : > { %669 = vperm.xlu0 %2055, %v656_v23   ;;  %vm1183_vm10 = vmand %vm3380_vm3, %vm617_vm11  ;;  %vm3417_vm3 = vcmp.le.s32.totalorder %v2199_v13, 6  ;;  %vm615_vm4 = vcmp.ge.s32.totalorder %v2373_v48, 1  ;;  %v659_v57 = vsel %vm2350_vm6, 1, %v2072_v3  ;;  %vm623_vm6 = vcmp.le.s32.totalorder %v2373_v48, 6 }
  0x1c   : > { %827 = vperm.xlu1 %2054, %v816_v24   ;;  %v2361_v46 = vsel %vm1183_vm10, 1, %v2072_v3  ;;  %vm1043_vm10 = vmand %vm605_vm0, %vm3382_vm5  ;;  %vm621_vm5 = vcmp.le.s32.totalorder %v2273_v29, 6  ;;  %v727_v63 = vsel %vm598_vm13, 1, %v2072_v3  ;;  %vm3424_vm11 = vcmp.le.s32.totalorder %v2199_v13, 6 }
  0x1d   : > { %1874 = vmatmul.mubr.msk.f32.gmra.mrb[2].mxu1 %vm3379_vm8, %v393_v25  ;;  %v2384_v50 = vsel %vm1043_vm10, 1, %v2072_v3  ;;  %vm1044_vm10 = vmand %vm606_vm15, %vm614_vm1  ;;  %v973_v12 = vsel %vm3424_vm11, 1, %v2072_v3  ;;  %vm600_vm11 = vcmp.ge.s32.totalorder %v2493_v14, 1  ;;  %v888_v19 = vsel %vm614_vm1, 1, %v2072_v3 }
  0x1e   : > { %1876 = vmatprep.mubr.msk.f32.mxu1 %vm3379_vm8, %v394_v26  ;;  %v2404_v53 = vsel %vm1044_vm10, 1, %v2072_v3  ;;  %vm1187_vm10 = vmand %vm605_vm0, %vm621_vm5  ;;  %v974_v24 = vsel %vm620_vm12, 1, %v2072_v3  ;;  %vm3432_vm1 = vcmp.le.s32.totalorder %v2166_v6, 6  ;;  %v889_v26 = vsel %vm615_vm4, 1, %v2072_v3 }
  0x1f   : > { %824 = vperm.xlu0 %2055, %v815_v27   ;;  %v2436_v58 = vsel %vm1187_vm10, 1, %v2072_v3  ;;  %vm3422_vm10 = vcmp.le.s32.totalorder %v2308_v37, 6  ;;  %v1116_v25 = vsel %vm3432_vm1, 1, %v2072_v3  ;;  %v975_v27 = vsel %vm621_vm5, 1, %v2072_v3 }
  0x20   : > { %740 = vperm.xlu1 %2054, %v725_v30   ;;  %v977_v30 = vsel %vm623_vm6, 1, %v2072_v3 }
  0x21   : > { %1877 = vmatmul.mubr.msk.f32.gmra.mrb[4].mxu1 %vm3379_vm8, %v395_v31 }
  0x22   : > { %1879 = vmatprep.mubr.msk.f32.mxu1 %vm3379_vm8, %v396_v33 }
  0x23   : > { %672 = vperm.xlu0 %2055, %v657_v35  }
  0x24   : > { %892 = vperm.xlu1 %2054, %v883_v36  }
  0x25   : > { %1880 = vmatmul.mubr.msk.f32.gmra.mrb[6].mxu1 %vm3379_vm8, %v397_v38  ;;  %vm1184_vm8 = vmand %vm3381_vm14, %vm618_vm9  ;;  %vm3427_vm9 = vcmp.ge.s32.totalorder %v2273_v29, 1 }
  0x26   : > { %v2377_v49 = vsel %vm1184_vm8, 1, %v2072_v3  ;;  %vm1185_vm14 = vmand %vm3384_vm7, %vm3417_vm3  ;;  %vm604_vm8 = vcmp.le.s32.totalorder %v2235_v20, 6  ;;  %vm3418_vm3 = vcmp.ge.s32.totalorder %v2268_v28, 1  ;;  %v887_v16 = vsel %vm3427_vm9, 1, %v2072_v3 }
  0x27   : > { %830 = vperm.xlu0 %2055, %v817_v42   ;;  %v2395_v52 = vsel %vm1185_vm14, 1, %v2072_v3  ;;  %vm1186_vm2 = vmand %vm604_vm8, %vm620_vm12  ;;  %v726_v54 = vsel %vm3418_vm3, 1, %v2072_v3  ;;  %vm3419_vm14 = vcmp.le.s32.totalorder %v2308_v37, 6  ;;  %vm3430_vm9 = vcmp.ge.s32.totalorder %v2199_v13, 1 }
  0x28   : > { %675 = vperm.xlu1 %2054, %v658_v45   ;;  %v2414_v55 = vsel %vm1186_vm2, 1, %v2072_v3  ;;  %vm1045_vm7 = vmand %vm3419_vm14, %vm615_vm4  ;;  %vm622_vm14 = vcmp.le.s32.totalorder %v2290_v34, 6  ;;  %vm3434_vm12 = vcmp.ge.s32.totalorder %v2245_v22, 1 }
  0x29   : > { %v2421_v56 = vsel %vm1045_vm7, 1, %v2072_v3  ;;  %vm3420_vm2 = vmmov %vm3418_vm3  ;;  %vm3421_vm7 = vcmp.ge.s32.totalorder %v2199_v13, 1  ;;  %v976_v29 = vsel %vm622_vm14, 1, %v2072_v3 }
  0x2a   : > { %vm811_vm3 = vmand %vm3420_vm2, %vm621_vm5  ;;  %v885_v59 = vsel %vm3421_vm7, 1, %v2072_v3  ;;  %vm608_vm5 = vcmp.le.s32.totalorder %v2493_v14, 6 }
  0x2b   : > { %895 = vperm.xlu0 %2055, %v884_v47   ;;  %vm1188_vm0 = vmand %vm606_vm15, %vm622_vm14  ;;  %v819_v61 = vsel %vm811_vm3, 1, %v2072_v3  ;;  %vm599_vm15 = vcmp.ge.s32.totalorder %v2308_v37, 1  ;;  %v1122_v32 = vsel %vm608_vm5, 1, %v2072_v3 }
  0x2c   : > { %833 = vperm.xlu1 %2054, %v818_v51   ;;  %v2447_v60 = vsel %vm1188_vm0, 1, %v2072_v3  ;;  %vm1189_vm2 = vmand %vm3422_vm10, %vm623_vm6  ;;  %vm3423_vm0 = vcmp.ge.s32.totalorder %v2245_v22, 1  ;;  %v728_v9 = vsel %vm599_vm15, 1, %v2072_v3  ;;  %vm3426_vm10 = vcmp.le.s32.totalorder %v2166_v6, 6 }
  0x2d   : > { %v2455_v62 = vsel %vm1189_vm2, 1, %v2072_v3  ;;  %vm652_vm3 = vmand %vm599_vm15, %vm615_vm4  ;;  %v886_v2 = vsel %vm3423_vm0, 1, %v2072_v3  ;;  %vm3429_vm0 = vcmp.le.s32.totalorder %v2147_v0, 6 }
  0x2e   : > { %v660_v4 = vsel %vm652_vm3, 1, %v2072_v3  ;;  %vm812_vm7 = vmand %vm598_vm13, %vm622_vm14  ;;  %vm3425_vm13 = vcmp.ge.s32.totalorder %v2182_v10, 1  ;;  %vm3428_vm3 = vcmp.ge.s32.totalorder %v2161_v5, 1  ;;  %v729_v5 = vsel %vm600_vm11, 1, %v2072_v3 }
  0x2f   : > { %743 = vperm.xlu0 %2055, %v726_v54   ;;  %v820_v8 = vsel %vm812_vm7, 1, %v2072_v3  ;;  %vm1040_vm2 = vmand %vm3426_vm10, %vm3425_vm13  ;;  %vm616_vm13 = vcmp.ge.s32.totalorder %v2498_v15, 1 }
  0x30   : > { %678 = vperm.xlu1 %2054, %v659_v57   ;;  %vm1039_vm7 = vmand %vm3429_vm0, %vm3428_vm3  ;;  %v1048_v10 = vsel %vm1040_vm2, 1, %v2072_v3  ;;  %vm3431_vm3 = vcmp.le.s32.totalorder %v2187_v11, 6  ;;  %v890_v22 = vsel %vm616_vm13, 1, %v2072_v3  ;;  %v1118_v11 = vsel %vm604_vm8, 1, %v2072_v3 }
  0x31   : > { %v1047_v17 = vsel %vm1039_vm7, 1, %v2072_v3  ;;  %vm653_vm10 = vmand %vm600_vm11, %vm616_vm13  ;;  %vm3433_vm7 = vcmp.le.s32.totalorder %v2147_v0, 6 }
  0x32   : > { %v661_v18 = vsel %vm653_vm10, 1, %v2072_v3  ;;  %vm813_vm2 = vmand %vm599_vm15, %vm623_vm6  ;;  %vm624_vm15 = vcmp.le.s32.totalorder %v2498_v15, 6  ;;  %v1115_v13 = vsel %vm3433_vm7, 1, %v2072_v3  ;;  %vm3412_vm6 = vmmov 0  }
  0x33   : > { %898 = vperm.xlu0 %2055, %v885_v59   ;;  %vm1041_vm0 = vmand %vm3431_vm3, %vm3430_vm9  ;;  %v821_v21 = vsel %vm813_vm2, 1, %v2072_v3  ;;  %v978_v31 = vsel %vm624_vm15, 1, %v2072_v3 }
  0x34   : > { %836 = vperm.xlu1 %2054, %v819_v61   ;;  %v1049_v23 = vsel %vm1041_vm0, 1, %v2072_v3  ;;  %vm814_vm10 = vmand %vm600_vm11, %vm624_vm15  ;;  %v1328_v61 = vld [vmem:[%s3366_s5 + $0x8] sm:$0xff] }
  0x35   : > { %vm1042_vm2 = vmand %vm604_vm8, %vm3434_vm12  ;;  %v822_v6 = vsel %vm814_vm10, 1, %v2072_v3 }
  0x36   : > { %v1050_v0 = vsel %vm1042_vm2, 1, %v2072_v3  ;;  %vm3435_vm4 = vmmov %vm3431_vm3 }
  0x37   : > { %746 = vperm.xlu0 %2055, %v727_v63   ;;  %v1117_v28 = vsel %vm3435_vm4, 1, %v2072_v3  ;;  %vm1046_vm8 = vmand %vm608_vm5, %vm616_vm13  ;;  %v3387_v63 = vmov 0.0|0.0  }
  0x38   : > { %980 = vperm.xlu1 %2054, %v971_v1   ;;  %v1054_v20 = vsel %vm1046_vm8, 1, %v2072_v3  ;;  %vm1190_vm14 = vmand %vm608_vm5, %vm624_vm15  ;;  %1980 = vmatprep.subr.bf16.mxu1 %v3387_v63 }
  0x39   : > { %v1198_v33 = vsel %vm1190_vm14, 1, %v2072_v3 }
  0x3b   : > { %901 = vperm.xlu0 %2055, %v886_v2  }
  0x3c   : > { %681 = vperm.xlu1 %2054, %v660_v4  }
  0x3f   : > { %983 = vperm.xlu0 %2055, %v972_v7  }
  0x40   : > { %839 = vperm.xlu1 %2054, %v820_v8  }
  0x43   : > { %749 = vperm.xlu0 %2055, %v728_v9  }
  0x44   : > { %986 = vperm.xlu1 %2054, %v973_v12  }
  0x47   : > { %904 = vperm.xlu0 %2055, %v887_v16  }
  0x48   : > { %1059 = vperm.xlu1 %2054, %v1048_v10  }
  0x4b   : > { %1056 = vperm.xlu0 %2055, %v1047_v17  }
  0x4c   : > { %752 = vperm.xlu1 %2054, %v729_v5   ;;  %v1329_v5 = vld [vmem:[%s3366_s5 + $0x10] sm:$0xff] }
  0x4f   : > { %684 = vperm.xlu0 %2055, %v661_v18   ;;  %v1330_v18 = vld [vmem:[%s3366_s5 + $0x18] sm:$0xff] }
  0x50   : > { %907 = vperm.xlu1 %2054, %v888_v19   ;;  %v1331_v19 = vld [vmem:[%s3366_s5 + $0x20] sm:$0xff] }
  0x53   : > { %842 = vperm.xlu0 %2055, %v821_v21  }
  0x54   : > { %1062 = vperm.xlu1 %2054, %v1049_v23  }
  0x57   : > { %989 = vperm.xlu0 %2055, %v974_v24   ;;  %v1984_v24 = vpack.c.bf16 %v1330_v18, %v1329_v5 }
  0x58   : > { %1127 = vperm.xlu1 %2054, %v1116_v25   ;;  %v1332_v25 = vld [vmem:[%s3366_s5 + $0x28] sm:$0xff] }
  0x5b   : > { %1124 = vperm.xlu0 %2055, %v1115_v13   ;;  %v3385_v13 = vmov 0.0  }
  0x5c   : > { %910 = vperm.xlu1 %2054, %v889_v26   ;;  %1914 = vmatprep.mubr.msk.f32.mxu1 %vm3412_vm6, %v3385_v13  ;;  %v1987_v26 = vpack.c.bf16 %v1332_v25, %v1331_v19 }
  0x5f   : > { %845 = vperm.xlu0 %2055, %v822_v6   ;;  %v1333_v6 = vld [vmem:[%s3366_s5 + $0x30] sm:$0xff] }
  0x60   : > { %1065 = vperm.xlu1 %2054, %v1050_v0   ;;  %v1334_v0 = vld [vmem:[%s3366_s5 + $0x38] sm:$0xff] }
  0x63   : > { %992 = vperm.xlu0 %2055, %v975_v27  }
  0x64   : > { %1200 = vperm.xlu1 %2054, %v2361_v46  }
  0x67   : > { %1130 = vperm.xlu0 %2055, %v1117_v28   ;;  %v635_v28 = vlaneseq }
  0x68   : > { %913 = vperm.xlu1 %2054, %v890_v22  }
  0x6b   : > { %1203 = vperm.xlu0 %2055, %v2377_v49  }
  0x6c   : > { %1068 = vperm.xlu1 %2054, %v2384_v50  }
  0x6f   : > { %995 = vperm.xlu0 %2055, %v976_v29   ;;  %v1990_v29 = vpack.c.bf16 %v1334_v0, %v1333_v6 }
  0x70   : > { %1206 = vperm.xlu1 %2054, %v2395_v52  }
  0x73   : > { %1133 = vperm.xlu0 %2055, %v1118_v11   ;;  %v1335_v11 = vld [vmem:[%s3366_s5 + $0x40] sm:$0xff] }
  0x74   : > { %1071 = vperm.xlu1 %2054, %v2404_v53  }
  0x77   : > { %998 = vperm.xlu0 %2055, %v977_v30   ;;  %v1336_v30 = vld [vmem:[%s3366_s5 + $0x48] sm:$0xff] }
  0x78   : > { %1209 = vperm.xlu1 %2054, %v2414_v55  }
  0x7b   : > { %1136 = vperm.xlu0 %2055, %v2318_v39  }
  0x7c   : > { %1074 = vperm.xlu1 %2054, %v2421_v56  }
  0x7f   : > { %1001 = vperm.xlu0 %2055, %v978_v31  }
  0x80   : > { %1212 = vperm.xlu1 %2054, %v2436_v58  }
  0x83   : > { %1139 = vperm.xlu0 %2055, %v2328_v40  }
  0x84   : > { %1142 = vperm.xlu1 %2054, %v2333_v41  }
  0x87   : > { %1077 = vperm.xlu0 %2055, %v1054_v20   ;;  %v2721_v20 = vshrl.u32 %v635_v28, 7 }
  0x88   : > { %1145 = vperm.xlu1 %2054, %v1122_v32   ;;  %v2726_v32 = vld [vmem:[%s3369_s8] ss:$0 sm:$0xff] }
  0x89   : > { %v772_v6 = vsub.s32 1, %v2721_v20  ;;  %vm637_vm11 = vcmp.lt.s32.totalorder %v2721_v20, 1  ;;  %vm798_vm13 = vcmp.lt.s32.totalorder %v2721_v20, 7 }
  0x8b   : > { %1215 = vperm.xlu0 %2055, %v2447_v60   ;;  %v1327_v60 = vld [vmem:[%s3366_s5] sm:$0xff] }
  0x8c   : > { %1221 = vperm.xlu1 %2054, %v1198_v33   ;;  %v1981_v1 = vpack.c.bf16 %v1328_v61, %v1327_v60  ;;  %v1993_v33 = vpack.c.bf16 %v1336_v30, %v1335_v11  ;;  %v1337_v60 = vld [vmem:[%s3366_s5 + $0x50] sm:$0xff]  ;;  %v1338_v61 = vld [vmem:[%s3366_s5 + $0x58] sm:$0xff]  ;;  %v1165_v11 = vsub.s32 7, %v2721_v20  ;;  %v1339_v30 = vld [vmem:[%s3366_s5 + $0x60] sm:$0xff] }
  0x8d   : > { %v1996_v28 = vpack.c.bf16 %v1338_v61, %v1337_v60 }
  0x8e   : > { %1982 = vmatpush3.bf16.msra.mxu1 %v1981_v1 }
  0x8f   : > { %1218 = vperm.xlu0 %2055, %v2455_v62   ;;  %v2597_v34 = vpop.permute.xlu1 %731  ;;  %1983 = vmatprep.subr.bf16.mxu1 %v3387_v63 }
  0x92   : > { %v2599_v35 = vpop.permute.xlu0 %663  ;;  %1985 = vmatpush3.bf16.msra.mxu1 %v1984_v24  ;;  %v953_v24 = vsub.s32 4, %v2721_v20 }
  0x93   : > { %v2601_v36 = vpop.permute.xlu1 %734  ;;  %1986 = vmatprep.subr.bf16.mxu1 %v3387_v63 }
  0x96   : > { %v2603_v37 = vpop.permute.xlu0 %666  ;;  %1988 = vmatpush3.bf16.msra.mxu1 %v1987_v26  ;;  %v2744_v26 = vld [vmem:[%s3365_s4] sm:$0xff] }
  0x97   : > { %v2605_v38 = vpop.permute.xlu1 %737  ;;  %1989 = vmatprep.subr.bf16.mxu1 %v3387_v63 }
  0x98   : > { %vm756_vm9 = vcmp.eq.s32.totalorder %v2605_v38, 1 }
  0x9a   : > { %v2607_v39 = vpop.permute.xlu0 %669  ;;  %1991 = vmatpush3.bf16.msra.mxu1 %v1990_v29 }
  0x9b   : > { %v2609_v40 = vpop.permute.xlu1 %827  ;;  %1992 = vmatprep.subr.bf16.mxu1 %v3387_v63 }
  0x9c   : > { %3436 = vst [vmem:[#allocation2_spill] sm:$0xff] %v2609_v40 }
  0x9e   : > { %v2611_v3 = vpop.permute.xlu0 %824  ;;  %1994 = vmatpush3.bf16.msra.mxu1 %v1993_v33 }
  0x9f   : > { %v2613_v41 = vpop.permute.xlu1 %740  ;;  %1995 = vmatprep.subr.bf16.mxu1 %v3387_v63  ;;  %v865_v63 = vsub.s32 2, %v2721_v20 }
  0xa0   : > { %vm757_vm3 = vcmp.eq.s32.totalorder %v2613_v41, 1 }
  0xa1   : > { %v2793_v40 = vrot.slane %v2744_v26, %v865_v63 }
  0xa2   : > { %v2615_v42 = vpop.permute.xlu0 %672  ;;  %1997 = vmatpush3.bf16.msra.mxu1 %v1996_v28 }
  0xa3   : > { %v2617_v43 = vpop.permute.xlu1 %892  ;;  %vm689_vm0 = vcmp.eq.s32.totalorder %v2615_v42, 1 }
  0xa6   : > { %v2619_v44 = vpop.permute.xlu0 %830 }
  0xa7   : > { %3437 = vst [vmem:[#allocation3_spill] sm:$0xff] %v2619_v44  ;;  %v2621_v45 = vpop.permute.xlu1 %675 }
  0xaa   : > { %v2623_v46 = vpop.permute.xlu0 %895 }
  0xab   : > { %3438 = vst [vmem:[#allocation4_spill] sm:$0xff] %v2623_v46  ;;  %v2625_v47 = vpop.permute.xlu1 %833 }
  0xac   : > { %vm850_vm1 = vcmp.eq.s32.totalorder %v2625_v47, 1 }
  0xae   : > { %v2627_v48 = vpop.permute.xlu0 %743 }
  0xaf   : > { %v2629_v49 = vpop.permute.xlu1 %678  ;;  %vm758_vm15 = vcmp.eq.s32.totalorder %v2627_v48, 1 }
  0xb0   : > { %vm691_vm10 = vcmp.eq.s32.totalorder %v2629_v49, 1 }
  0xb2   : > { %v2631_v50 = vpop.permute.xlu0 %898 }
  0xb3   : > { %3439 = vst [vmem:[#allocation5_spill] sm:$0xff] %v2631_v50  ;;  %v2633_v51 = vpop.permute.xlu1 %836 }
  0xb4   : > { %vm851_vm12 = vcmp.eq.s32.totalorder %v2633_v51, 1 }
  0xb6   : > { %v2635_v52 = vpop.permute.xlu0 %746 }
  0xb7   : > { %v2637_v53 = vpop.permute.xlu1 %980  ;;  %vm759_vm7 = vcmp.eq.s32.totalorder %v2635_v52, 1 }
  0xb8   : > { %3440 = vst [vmem:[#allocation6_spill] sm:$0xff] %v2637_v53 }
  0xba   : > { %v2639_v54 = vpop.permute.xlu0 %901 }
  0xbb   : > { %v2641_v55 = vpop.permute.xlu1 %681  ;;  %vm918_vm2 = vcmp.eq.s32.totalorder %v2639_v54, 1 }
  0xbe   : > { %v2643_v56 = vpop.permute.xlu0 %983 }
  0xbf   : > { %3441 = vst [vmem:[#allocation7_spill] sm:$0xff] %v2643_v56  ;;  %v2645_v57 = vpop.permute.xlu1 %839  ;;  %v1097_v56 = vsub.s32 6, %v2721_v20 }
  0xc0   : > { %vm852_vm4 = vcmp.eq.s32.totalorder %v2645_v57, 1 }
  0xc2   : > { %v2647_v58 = vpop.permute.xlu0 %749 }
  0xc3   : > { %v2649_v59 = vpop.permute.xlu1 %986 }
  0xc4   : > { %3442 = vst [vmem:[#allocation8_spill] sm:$0xff] %v2649_v59 }
  0xc6   : > { %v2657_v62 = vpop.permute.xlu0 %904 }
  0xc7   : > { %v2660_v2 = vpop.permute.xlu1 %1059 }
  0xc8   : > { %3443 = vst [vmem:[#allocation9_spill] sm:$0xff] %v2660_v2  ;;  %v933_v2 = vsub.s32 3, %v2721_v20 }
  0xca   : > { %v2663_v4 = vpop.permute.xlu0 %1056  ;;  %v2797_v46 = vrot.slane %v2744_v26, %v933_v2 }
  0xcb   : > { %3444 = vst [vmem:[#allocation10_spill] sm:$0xff] %v2663_v4  ;;  %v2665_v7 = vpop.permute.xlu1 %752  ;;  %v3454_v4 = vmov 0.0|0.0  }
  0xcc   : > { %1998 = vmatprep.subr.bf16.mxu1 %v3454_v4  ;;  %vm761_vm6 = vcmp.eq.s32.totalorder %v2665_v7, 1 }
  0xce   : > { %v2667_v8 = vpop.permute.xlu0 %684 }
  0xcf   : > { %3445 = vst [vmem:[#allocation11_spill] sm:$0xff] %v2667_v8  ;;  %v2669_v9 = vpop.permute.xlu1 %907 }
  0xd0   : > { %vm920_vm5 = vcmp.eq.s32.totalorder %v2669_v9, 1 }
  0xd2   : > { %v2671_v12 = vpop.permute.xlu0 %842 }
  0xd3   : > { %v2673_v14 = vpop.permute.xlu1 %1062 }
  0xd4   : > { %3446 = vst [vmem:[#allocation12_spill] sm:$0xff] %v2673_v14 }
  0xd6   : > { %v2675_v15 = vpop.permute.xlu0 %989 }
  0xd7   : > { %v2677_v16 = vpop.permute.xlu1 %1127  ;;  %vm1006_vm8 = vcmp.eq.s32.totalorder %v2675_v15, 1 }
  0xd8   : > { %3447 = vst [vmem:[#allocation13_spill] sm:$0xff] %v2677_v16  ;;  %v2768_v16 = vrot.slane %v2744_v26, %v772_v6  ;;  %v1341_v6 = vld [vmem:[%s3366_s5 + $0x70] sm:$0xff] }
  0xda   : > { %v2679_v10 = vpop.permute.xlu0 %1124 }
  0xdb   : > { %3448 = vst [vmem:[#allocation14_spill] sm:$0xff] %v2679_v10  ;;  %v2681_v17 = vpop.permute.xlu1 %910 }
  0xde   : > { %v2692_v21 = vpop.permute.xlu0 %845 }
  0xdf   : > { %3449 = vst [vmem:[#allocation15_spill] sm:$0xff] %v2692_v21  ;;  %v2694_v23 = vpop.permute.xlu1 %1065 }
  0xe0   : > { %vm1082_vm14 = vcmp.eq.s32.totalorder %v2694_v23, 1 }
  0xe2   : > { %v2710_v22 = vpop.permute.xlu0 %992 }
  0xe3   : > { %v2708_v27 = vpop.permute.xlu1 %1200 }
  0xe4   : > { %3450 = vst [vmem:[#allocation16_spill] sm:$0xff] %v2708_v27  ;;  %v2762_v27 = vrot.slane %v2744_v26, %v953_v24  ;;  %v2774_v24 = vrot.slane %v2744_v26, %v1165_v11 }
  0xe6   : > { %v2735_v1 = vpop.permute.xlu0 %1130 }
  0xe7   : > { %v2719_v31 = vpop.permute.xlu1 %913  ;;  %3452 = vst [vmem:[#allocation18_spill] sm:$0xff] %v2735_v1 }
  0xe8   : > { %3451 = vst [vmem:[#allocation17_spill] sm:$0xff] %v2719_v31 }
  0xea   : > { %v2765_v10 = vpop.permute.xlu0 %1203 }
  0xeb   : > { %v2739_v25 = vpop.permute.xlu1 %1068  ;;  %3453 = vst [vmem:[#allocation19_spill] sm:$0xff] %v2765_v10 }
  0xec   : > { %v1872_v5 = vpop.f32.mrb[0].mxu1 }
  0xed   : > { %v504_v18 = vadd.f32 %v1872_v5, %v2726_v32  ;;  %v498_v19 = vpop.f32.mrb[1].mxu1  ;;  %v1340_v5 = vld [vmem:[%s3366_s5 + $0x68] sm:$0xff] }
  0xee   : > { %v2748_v0 = vadd.f32 %v2726_v32, %v498_v19  ;;  %v1999_v19 = vpack.c.bf16 %v1340_v5, %v1339_v30  ;;  %v2808_v63 = vpop.permute.xlu0 %995 }
  0xef   : > { %v538_v29 = vadd.f32 3.0, %v504_v18  ;;  %v2783_v28 = vpop.permute.xlu1 %1206 }
  0xf0   : > { %v537_v13 = vadd.f32 3.0, %v2748_v0  ;;  %v1875_v1 = vpop.f32.mrb[2].mxu1  ;;  %3455 = vst [vmem:[#allocation20_spill] sm:$0xff] %v2783_v28  ;;  %2000 = vmatpush3.bf16.msra.mxu1 %v1999_v19 }
  0xf1   : > { %v546_v33 = vmax.f32 %v538_v29, 0.0  ;;  %v514_v60 = vadd.f32 %v1875_v1, %v2726_v32  ;;  %v508_v61 = vpop.f32.mrb[3].mxu1  ;;  %v1021_v1 = vsub.s32 5, %v2721_v20  ;;  %2001 = vmatprep.subr.bf16.mxu1 %v3454_v4 }
  0xf2   : > { %v509_v14 = vadd.f32 %v2726_v32, %v508_v61  ;;  %v1342_v61 = vld [vmem:[%s3366_s5 + $0x78] sm:$0xff]  ;;  %v545_v10 = vmax.f32 %v537_v13, 0.0 }
  0xf3   : > { %v554_v29 = vmin.f32 %v546_v33, 6.0  ;;  %v540_v59 = vadd.f32 3.0, %v514_v60  ;;  %v3456_v33 = vsub.s32 0, %v2721_v20  ;;  %v2002_v21 = vpack.c.bf16 %v1342_v61, %v1341_v6 }
  0xf4   : > { %v539_v30 = vadd.f32 3.0, %v509_v14  ;;  %v1878_v5 = vpop.f32.mrb[4].mxu1  ;;  %v553_v2 = vmin.f32 %v545_v10, 6.0  ;;  %v2814_v61 = vrot.slane %v2744_v26, %v1097_v56 }
  0xf5   : > { %v2788_v11 = vrot.slane %v2744_v26, %v3456_v33  ;;  %v562_v50 = vmul.f32 %v554_v29, %v504_v18  ;;  %v548_v44 = vmax.f32 %v540_v59, 0.0  ;;  %v524_v53 = vadd.f32 %v1878_v5, %v2726_v32  ;;  %v518_v31 = vpop.f32.mrb[5].mxu1  ;;  %2003 = vmatpush3.bf16.msra.mxu1 %v2002_v21 }
  0xf6   : > { %v547_v13 = vmax.f32 %v539_v30, 0.0  ;;  %v519_v28 = vadd.f32 %v2726_v32, %v518_v31  ;;  %v2804_v18 = vrot.slane %v2744_v26, %v1021_v1  ;;  %v2818_v30 = vpop.permute.xlu1 %1071  ;;  %2004 = vmatprep.subr.bf16.mxu1 %v3454_v4  ;;  %v561_v56 = vmul.f32 %v553_v2, %v2748_v0  ;;  %v2837_v0 = vpop.permute.xlu0 %1133 }
  0xf7   : > { %v2799_v33 = vmul.f32 0.16666667, %v562_v50  ;;  %v556_v8 = vmin.f32 %v548_v44, 6.0  ;;  %v542_v59 = vadd.f32 3.0, %v524_v53 }
  0xf8   : > { %v555_v31 = vmin.f32 %v547_v13, 6.0  ;;  %v541_v19 = vadd.f32 3.0, %v519_v28  ;;  %v1881_v50 = vpop.f32.mrb[6].mxu1 }
  0xf9   : > { %v2811_v44 = vsel %vm756_vm9, %v2799_v33, 0.0  ;;  %v564_v29 = vmul.f32 %v556_v8, %v514_v60  ;;  %v550_v6 = vmax.f32 %v542_v59, 0.0  ;;  %v528_v1 = vpop.f32.mrb[7].mxu1  ;;  %v3404_v13 = vrot.slane %v2799_v33, 7 }
  0xfa   : > { %v563_v38 = vmul.f32 %v555_v31, %v509_v14  ;;  %v549_v10 = vmax.f32 %v541_v19, 0.0  ;;  %vm1150_vm9 = vcmp.eq.s32.totalorder %v2837_v0, 1  ;;  %v791_v7 = vrot.slane %v2799_v33, 1 }
  0xfb   : > { %v2822_v5 = vmul.f32 0.16666667, %v564_v29  ;;  %v558_v8 = vmin.f32 %v550_v6, 6.0  ;;  %v2847_v6 = vmul.f32 0.16666667, %v561_v56 }
  0xfc   : > { %v2827_v26 = vmul.f32 0.16666667, %v563_v38  ;;  %v557_v14 = vmin.f32 %v549_v10, 6.0  ;;  %v1210_v10 = vpop.permute.xlu1 %1209 }
  0xfd   : > { %v630_v48 = vrot.slane %v2822_v5, 7  ;;  %v766_v21 = vsel %vm758_vm15, %v2822_v5, 0.0  ;;  %v793_v60 = vrot.slane %v2822_v5, 1  ;;  %v566_v19 = vmul.f32 %v558_v8, %v524_v53 }
  0xfe   : > { %v629_v59 = vrot.slane %v2827_v26, 7  ;;  %v765_v2 = vsel %vm757_vm3, %v2827_v26, 0.0  ;;  %v3403_v31 = vrot.slane %v2827_v26, 1  ;;  %v565_v29 = vmul.f32 %v557_v14, %v519_v28 }
  0xff   : > { %v2866_v28 = vmul.f32 0.16666667, %v566_v19  ;;  %vm690_vm3 = vcmp.eq.s32.totalorder %v2621_v45, 1  ;;  %vm1007_vm15 = vcmp.eq.s32.totalorder %v2710_v22, 1  ;;  %v958_v51 = vmul.f32 %v2762_v27, %v2822_v5  ;;  %v2958_v45 = vld [vmem:[%s3365_s4 + $0x8] ss:$0 sm:$0xff] }
 0x100   : > { %v2853_v38 = vsel %vm637_vm11, %v3404_v13, %v629_v59  ;;  %v2859_v41 = vsel %vm798_vm13, %v3403_v31, %v793_v60  ;;  %v2863_v53 = vsel %vm637_vm11, %v629_v59, %v630_v48  ;;  %v2868_v8 = vmul.f32 0.16666667, %v565_v29  ;;  %v2895_v13 = vpop.permute.xlu0 %998 }
 0x101   : > { %3457 = vst [vmem:[#allocation21_spill] sm:$0xff] %v2853_v38  ;;  %3458 = vst [vmem:[#allocation22_spill] sm:$0xff] %v2859_v41  ;;  %v697_v56 = vsel %vm689_vm0, %v2853_v38, 0.0  ;;  %v858_v14 = vsel %vm850_vm1, %v2859_v41, 0.0  ;;  %v777_v31 = vmul.f32 %v2768_v16, %v765_v2  ;;  %v926_v19 = vsel %vm918_vm2, %v2863_v53, 0.0 }
 0x102   : > { %v709_v59 = vmul.f32 %v2788_v11, %v697_v56  ;;  %v534_v29 = vadd.f32 %v1881_v50, %v2726_v32  ;;  %v631_v42 = vrot.slane %v2868_v8, 7  ;;  %v767_v47 = vsel %vm759_vm7, %v2868_v8, 0.0 }
 0x103   : > { %v794_v4 = vrot.slane %v2868_v8, 1  ;;  %vm1226_vm0 = vcmp.eq.s32.totalorder %v1210_v10, 1  ;;  %vm919_vm1 = vcmp.eq.s32.totalorder %v2657_v62, 1  ;;  %v3410_v56 = vrot.slane %v2866_v28, 1 }
 0x104   : > { %v785_v2 = vadd.f32 %v777_v31, %v709_v59  ;;  %v870_v54 = vmul.f32 %v2793_v40, %v858_v14  ;;  %v2893_v50 = vadd.f32 %v2726_v32, %v528_v1  ;;  %v3459_v41 = vrot.slane %v2866_v28, 7 }
 0x105   : > { %v641_v38 = vsel %vm637_vm11, %v630_v48, %v631_v42  ;;  %v2907_v31 = vsel %vm798_vm13, %v793_v60, %v794_v4  ;;  %v938_v14 = vmul.f32 %v2797_v46, %v926_v19  ;;  %v801_v1 = vsel %vm798_vm13, %v794_v4, %v3410_v56 }
 0x106   : > { %v2901_v52 = vsel %vm637_vm11, %v631_v42, %v3459_v41  ;;  %3460 = vst [vmem:[#allocation23_spill] sm:$0xff] %v2907_v31  ;;  %v699_v32 = vsel %vm691_vm10, %v641_v38, 0.0  ;;  %v859_v48 = vsel %vm851_vm12, %v2907_v31, 0.0  ;;  %v878_v41 = vadd.f32 %v870_v54, %v785_v2 }
 0x107   : > { %v711_v60 = vmul.f32 %v2788_v11, %v699_v32  ;;  %v779_v59 = vmul.f32 %v2768_v16, %v767_v47  ;;  %v860_v19 = vsel %vm852_vm4, %v801_v1, 0.0  ;;  %v544_v42 = vadd.f32 3.0, %v534_v29 }
 0x108   : > { %vm692_vm7 = vcmp.eq.s32.totalorder %v2641_v55, 1  ;;  %vm760_vm10 = vcmp.eq.s32.totalorder %v2647_v58, 1  ;;  %v928_v49 = vsel %vm920_vm5, %v2901_v52, 0.0  ;;  %v946_v4 = vadd.f32 %v938_v14, %v878_v41 }
 0x109   : > { %v1014_v47 = vsel %vm1006_vm8, %v2907_v31, 0.0  ;;  %v778_v57 = vmul.f32 %v2768_v16, %v766_v21  ;;  %v787_v2 = vadd.f32 %v779_v59, %v711_v60  ;;  %v872_v54 = vmul.f32 %v2793_v40, %v860_v19  ;;  %v1137_v59 = vpop.permute.xlu0 %1136 }
 0x10a   : > { %v1090_v32 = vsel %vm1082_vm14, %v641_v38, 0.0  ;;  %vm754_vm12 = vcmp.eq.s32.totalorder %v2597_v34, 1  ;;  %v871_v9 = vmul.f32 %v2793_v40, %v859_v48  ;;  %v966_v14 = vadd.f32 %v958_v51, %v946_v4 }
 0x10b   : > { %v1026_v41 = vmul.f32 %v2804_v18, %v1014_v47  ;;  %v1158_v15 = vsel %vm1150_vm9, %v2868_v8, 0.0  ;;  %v880_v56 = vadd.f32 %v872_v54, %v787_v2  ;;  %v940_v21 = vmul.f32 %v2797_v46, %v928_v49  ;;  %v2961_v2 = vpop.permute.xlu1 %1074 }
 0x10c   : > { %v552_v60 = vmax.f32 %v544_v42, 0.0  ;;  %v698_v23 = vsel %vm690_vm3, %v2863_v53, 0.0  ;;  %v1102_v31 = vmul.f32 %v2814_v61, %v1090_v32  ;;  %v1234_v48 = vsel %vm1226_vm0, %v801_v1, 0.0 }
 0x10d   : > { %v1034_v19 = vadd.f32 %v1026_v41, %v966_v14  ;;  %v710_v4 = vmul.f32 %v2788_v11, %v698_v23  ;;  %vm847_vm2 = vcmp.eq.s32.totalorder %v2611_v3, 1  ;;  %vm1083_vm4 = vcmp.eq.s32.totalorder %v2739_v25, 1 }
 0x10e   : > { %v948_v0 = vadd.f32 %v940_v21, %v880_v56  ;;  %v560_v51 = vmin.f32 %v552_v60, 6.0  ;;  %v927_v42 = vsel %vm919_vm1, %v641_v38, 0.0  ;;  %v1170_v10 = vmul.f32 %v2774_v24, %v1158_v15  ;;  %v1002_v60 = vpop.permute.xlu0 %1001 }
 0x10f   : > { %v1110_v49 = vadd.f32 %v1102_v31, %v1034_v19  ;;  %v786_v47 = vadd.f32 %v778_v57, %v710_v4  ;;  %v790_v54 = vrot.slane %v2847_v6, 1  ;;  %v1015_v56 = vsel %vm1007_vm15, %v801_v1, 0.0 }
 0x110   : > { %v1246_v32 = vmul.f32 %v2958_v45, %v1234_v48  ;;  %v568_v62 = vmul.f32 %v560_v51, %v534_v29  ;;  %v543_v38 = vadd.f32 3.0, %v2893_v50  ;;  %v939_v21 = vmul.f32 %v2797_v46, %v927_v42  ;;  %v1213_v42 = vpop.permute.xlu1 %1212 }
 0x111   : > { %v1178_v14 = vadd.f32 %v1170_v10, %v1110_v49  ;;  %v879_v41 = vadd.f32 %v871_v9, %v786_v47  ;;  %v959_v31 = vmul.f32 %v2762_v27, %v2868_v8  ;;  %v700_v22 = vsel %vm692_vm7, %v2901_v52, 0.0 }
 0x112   : > { %v2971_v57 = vmul.f32 0.16666667, %v568_v62  ;;  %v551_v15 = vmax.f32 %v543_v38, 0.0  ;;  %v768_v29 = vsel %vm760_vm10, %v2866_v28, 0.0  ;;  %v712_v23 = vmul.f32 %v2788_v11, %v700_v22  ;;  %v1140_v62 = vpop.permute.xlu0 %1139 }
 0x113   : > { %v2979_v1 = vadd.f32 %v1246_v32, %v1178_v14  ;;  %v947_v9 = vadd.f32 %v939_v21, %v879_v41  ;;  %v780_v19 = vmul.f32 %v2768_v16, %v768_v29  ;;  %v1091_v8 = vsel %vm1083_vm4, %v2901_v52, 0.0 }
 0x114   : > { %v559_v48 = vmin.f32 %v551_v15, 6.0  ;;  %v762_v55 = vsel %vm754_vm12, %v2971_v57, 0.0  ;;  %v797_v4 = vrot.slane %v2971_v57, 1  ;;  %v1027_v58 = vmul.f32 %v2804_v18, %v1015_v56  ;;  %v1143_v22 = vpop.permute.xlu1 %1142 }
 0x115   : > { %v967_v51 = vadd.f32 %v959_v31, %v947_v9  ;;  %vm1151_vm5 = vcmp.eq.s32.totalorder %v1137_v59, 1  ;;  %v788_v49 = vadd.f32 %v780_v19, %v712_v23  ;;  %v960_v25 = vmul.f32 %v2762_v27, %v2866_v28 }
 0x116   : > { %v1159_v10 = vsel %vm1151_vm5, %v2866_v28, 0.0  ;;  %v567_v47 = vmul.f32 %v559_v48, %v2893_v50  ;;  %v2999_v34 = vsel %vm798_vm13, %v797_v4, %v790_v54  ;;  %vm686_vm8 = vcmp.eq.s32.totalorder %v2599_v35, 1 }
 0x117   : > { %v1035_v52 = vadd.f32 %v1027_v58, %v967_v51  ;;  %v1103_v59 = vmul.f32 %v2814_v61, %v1091_v8  ;;  %v855_v50 = vsel %vm847_vm2, %v2999_v34, 0.0  ;;  %vm853_vm14 = vcmp.eq.s32.totalorder %v2671_v12, 1 }
 0x118   : > { %v3009_v56 = vmul.f32 0.16666667, %v567_v47  ;;  %v634_v32 = vrot.slane %v2971_v57, 7  ;;  %v968_v38 = vadd.f32 %v960_v25, %v948_v0  ;;  %vm921_vm9 = vcmp.eq.s32.totalorder %v2681_v17, 1 }
 0x119   : > { %vm1008_vm3 = vcmp.eq.s32.totalorder %v2808_v63, 1  ;;  %v1111_v14 = vadd.f32 %v1103_v59, %v1035_v52  ;;  %v1171_v41 = vmul.f32 %v2774_v24, %v1159_v10  ;;  %vm687_vm0 = vcmp.eq.s32.totalorder %v2603_v37, 1  ;;  %v3463_v10 = vld [vmem:[#allocation11_spill] sm:$0xff] }
 0x11a   : > { %vm688_vm1 = vcmp.eq.s32.totalorder %v2607_v39, 1  ;;  %v776_v3 = vmul.f32 %v2768_v16, %v2811_v44  ;;  %vm1084_vm15 = vcmp.eq.s32.totalorder %v2818_v30, 1  ;;  %v633_v21 = vrot.slane %v3009_v56, 7 }
 0x11b   : > { %v796_v0 = vrot.slane %v3009_v56, 1  ;;  %vm755_vm7 = vcmp.eq.s32.totalorder %v2601_v36, 1  ;;  %v1179_v31 = vadd.f32 %v1171_v41, %v1111_v14  ;;  %v774_v15 = vmul.f32 %v2768_v16, %v762_v55  ;;  %v3469_v36 = vld [vmem:[#allocation6_spill] sm:$0xff] }
 0x11c   : > { %vm1010_vm10 = vcmp.eq.s32.totalorder %v1002_v60, 1  ;;  %vm1152_vm12 = vcmp.eq.s32.totalorder %v1140_v62, 1  ;;  %vm915_vm2 = vcmp.eq.s32.totalorder %v2617_v43, 1  ;;  %v638_v29 = vsel %vm637_vm11, %v633_v21, %v634_v32 }
 0x11d   : > { %v3461_v44 = vrot.slane %v2866_v28, 7  ;;  %v3462_v23 = vrot.slane %v2866_v28, 1  ;;  %v1160_v60 = vsel %vm1152_vm12, %v3009_v56, 0.0  ;;  %v694_v8 = vsel %vm686_vm8, %v638_v29, 0.0 }
 0x11e   : > { %v1018_v48 = vsel %vm1010_vm10, %v2999_v34, 0.0  ;;  %vm1227_vm4 = vcmp.eq.s32.totalorder %v1213_v42, 1  ;;  %v627_v55 = vrot.slane %v2847_v6, 7  ;;  %v706_v58 = vmul.f32 %v2788_v11, %v694_v8 }
 0x11f   : > { %v639_v9 = vsel %vm637_vm11, %v3461_v44, %v633_v21  ;;  %v800_v19 = vsel %vm798_vm13, %v3462_v23, %v796_v0  ;;  %v867_v51 = vmul.f32 %v2793_v40, %v855_v50  ;;  %vm1153_vm5 = vcmp.eq.s32.totalorder %v1143_v22, 1  ;;  %v3059_v21 = vpop.permute.xlu0 %1077 }
 0x120   : > { %v861_v28 = vsel %vm853_vm14, %v800_v19, 0.0  ;;  %vm693_vm12 = vcmp.eq.s32.totalorder %v3463_v10, 1  ;;  %v929_v47 = vsel %vm921_vm9, %v639_v9, 0.0  ;;  %v1016_v42 = vsel %vm1008_vm3, %v800_v19, 0.0 }
 0x121   : > { %v873_v35 = vmul.f32 %v2793_v40, %v861_v28  ;;  %v1172_v25 = vmul.f32 %v2774_v24, %v1160_v60  ;;  %v782_v52 = vadd.f32 %v774_v15, %v706_v58  ;;  %v941_v59 = vmul.f32 %v2797_v46, %v929_v47  ;;  %v3465_v15 = vld [vmem:[#allocation15_spill] sm:$0xff]  ;;  %v3466_v28 = vld [vmem:[#allocation4_spill] sm:$0xff] }
 0x122   : > { %v1028_v12 = vmul.f32 %v2804_v18, %v1016_v42  ;;  %v1235_v50 = vsel %vm1227_vm4, %v800_v19, 0.0  ;;  %v1092_v41 = vsel %vm1084_vm15, %v639_v9, 0.0  ;;  %v3464_v17 = vrot.slane %v2799_v33, 7 }
 0x123   : > { %v881_v62 = vadd.f32 %v873_v35, %v788_v49  ;;  %v1247_v14 = vmul.f32 %v2958_v45, %v1235_v50  ;;  %vm854_vm8 = vcmp.eq.s32.totalorder %v3465_v15, 1  ;;  %v875_v44 = vadd.f32 %v867_v51, %v782_v52 }
 0x124   : > { %v3065_v63 = vsel %vm637_vm11, %v627_v55, %v3464_v17  ;;  %v1036_v23 = vadd.f32 %v1028_v12, %v968_v38  ;;  %v1104_v19 = vmul.f32 %v2814_v61, %v1092_v41  ;;  %v645_v49 = vsel %vm637_vm11, %v634_v32, %v627_v55  ;;  %v3468_v55 = vld [vmem:[#allocation17_spill] sm:$0xff] }
 0x125   : > { %v949_v60 = vadd.f32 %v941_v59, %v881_v62  ;;  %v3071_v30 = vadd.f32 %v1247_v14, %v1179_v31  ;;  %v695_v8 = vsel %vm687_vm0, %v645_v49, 0.0  ;;  %v696_v58 = vsel %vm688_vm1, %v3065_v63, 0.0  ;;  %v3467_v31 = vld [vmem:[#allocation2_spill] sm:$0xff]  ;;  %v1216_v62 = vpop.permute.xlu0 %1215 }
 0x126   : > { %vm916_vm14 = vcmp.eq.s32.totalorder %v3466_v28, 1  ;;  %v1112_v35 = vadd.f32 %v1104_v19, %v1036_v23  ;;  %v707_v38 = vmul.f32 %v2788_v11, %v695_v8  ;;  %v708_v51 = vmul.f32 %v2788_v11, %v696_v58  ;;  %v1146_v23 = vpop.permute.xlu1 %1145  ;;  %v3470_v8 = vld [vmem:[#allocation3_spill] sm:$0xff] }
 0x127   : > { %v763_v32 = vsel %vm755_vm7, %v2847_v6, 0.0  ;;  %vm848_vm11 = vcmp.eq.s32.totalorder %v3467_v31, 1  ;;  %vm922_vm9 = vcmp.eq.s32.totalorder %v3468_v55, 1  ;;  %v1161_v37 = vsel %vm1153_vm5, %v2971_v57, 0.0  ;;  %v3472_v58 = vld [vmem:[#allocation7_spill] sm:$0xff]  ;;  %v3473_v55 = vld [vmem:[#allocation10_spill] sm:$0xff] }
 0x128   : > { %v775_v39 = vmul.f32 %v2768_v16, %v763_v32  ;;  %v923_v47 = vsel %vm915_vm2, %v645_v49, 0.0  ;;  %v930_v42 = vsel %vm922_vm9, %v638_v29, 0.0  ;;  %v1180_v52 = vadd.f32 %v1172_v25, %v1112_v35 }
 0x129   : > { %v3091_v59 = vadd.f32 %v776_v3, %v708_v51  ;;  %v935_v12 = vmul.f32 %v2797_v46, %v923_v47  ;;  %vm1003_vm3 = vcmp.eq.s32.totalorder %v3469_v36, 1  ;;  %vm1009_vm0 = vcmp.eq.s32.totalorder %v2895_v13, 1 }
 0x12a   : > { %vm1085_vm1 = vcmp.eq.s32.totalorder %v2961_v2, 1  ;;  %v1030_v22 = vmul.f32 %v2804_v18, %v1018_v48  ;;  %v783_v50 = vadd.f32 %v775_v39, %v707_v38  ;;  %v1173_v14 = vmul.f32 %v2774_v24, %v1161_v37  ;;  %v1222_v47 = vpop.permute.xlu1 %1221 }
 0x12b   : > { %v943_v43 = vadd.f32 %v935_v12, %v875_v44  ;;  %v701_v25 = vsel %vm693_vm12, %v639_v9, 0.0  ;;  %v769_v3 = vsel %vm761_vm6, %v3009_v56, 0.0  ;;  %v942_v41 = vmul.f32 %v2797_v46, %v930_v42  ;;  %v1219_v42 = vpop.permute.xlu0 %1218 }
 0x12c   : > { %v1093_v17 = vsel %vm1085_vm1, %v638_v29, 0.0  ;;  %v713_v2 = vmul.f32 %v2788_v11, %v701_v25  ;;  %v781_v48 = vmul.f32 %v2768_v16, %v769_v3  ;;  %v799_v10 = vsel %vm798_vm13, %v796_v0, %v797_v4 }
 0x12d   : > { %v961_v9 = vmul.f32 %v2762_v27, %v3009_v56  ;;  %vm1228_vm15 = vcmp.eq.s32.totalorder %v1216_v62, 1  ;;  %vm1086_vm6 = vcmp.eq.s32.totalorder %v3059_v21, 1  ;;  %v862_v11 = vsel %vm854_vm8, %v799_v10, 0.0  ;;  %v3471_v56 = vld [vmem:[#allocation5_spill] sm:$0xff]  ;;  %v3474_v21 = vld [vmem:[#allocation8_spill] sm:$0xff] }
 0x12e   : > { %v789_v29 = vadd.f32 %v781_v48, %v713_v2  ;;  %v1017_v16 = vsel %vm1009_vm0, %v799_v10, 0.0  ;;  %v874_v44 = vmul.f32 %v2793_v40, %v862_v11  ;;  %v1236_v0 = vsel %vm1228_vm15, %v799_v10, 0.0 }
 0x12f   : > { %v969_v19 = vadd.f32 %v961_v9, %v949_v60  ;;  %v1029_v4 = vmul.f32 %v2804_v18, %v1017_v16  ;;  %vm849_vm7 = vcmp.eq.s32.totalorder %v3470_v8, 1  ;;  %vm917_vm10 = vcmp.eq.s32.totalorder %v3471_v56, 1 }
 0x130   : > { %vm1004_vm2 = vcmp.eq.s32.totalorder %v3472_v58, 1  ;;  %vm1154_vm4 = vcmp.eq.s32.totalorder %v1146_v23, 1  ;;  %v1248_v35 = vmul.f32 %v2958_v45, %v1236_v0  ;;  %v805_v13 = vsel %vm798_vm13, %v790_v54, %v791_v7  ;;  %v3481_v58 = vld [vmem:[#allocation16_spill] sm:$0xff] }
 0x131   : > { %v924_v15 = vsel %vm916_vm14, %v3065_v63, 0.0  ;;  %v1105_v60 = vmul.f32 %v2814_v61, %v1093_v17  ;;  %v882_v38 = vadd.f32 %v874_v44, %v789_v29  ;;  %v1037_v51 = vadd.f32 %v1029_v4, %v969_v19 }
 0x132   : > { %v856_v32 = vsel %vm848_vm11, %v805_v13, 0.0  ;;  %vm1079_vm5 = vcmp.eq.s32.totalorder %v3473_v55, 1  ;;  %v1094_v37 = vsel %vm1086_vm6, %v645_v49, 0.0  ;;  %v3140_v39 = vadd.f32 %v1248_v35, %v1180_v52  ;;  %v3475_v49 = vld [vmem:[#allocation9_spill] sm:$0xff]  ;;  %v3483_v55 = vld [vmem:[#allocation18_spill] sm:$0xff] }
 0x133   : > { %v868_v54 = vmul.f32 %v2793_v40, %v856_v32  ;;  %v955_v28 = vmul.f32 %v2762_v27, %v2847_v6  ;;  %v1162_v12 = vsel %vm1154_vm4, %v2847_v6, 0.0  ;;  %v950_v62 = vadd.f32 %v942_v41, %v882_v38  ;;  %v3477_v35 = vld [vmem:[#allocation21_spill] sm:$0xff] }
 0x134   : > { %v962_v31 = vmul.f32 %v2762_v27, %v2971_v57  ;;  %v1011_v25 = vsel %vm1003_vm3, %v805_v13, 0.0  ;;  %vm1005_vm12 = vcmp.eq.s32.totalorder %v3474_v21, 1  ;;  %vm1080_vm8 = vcmp.eq.s32.totalorder %v3475_v49, 1 }
 0x135   : > { %v876_v52 = vadd.f32 %v868_v54, %v783_v50  ;;  %v936_v3 = vmul.f32 %v2797_v46, %v924_v15  ;;  %v963_v17 = vadd.f32 %v955_v28, %v943_v43  ;;  %v1023_v23 = vmul.f32 %v2804_v18, %v1011_v25  ;;  %v3482_v54 = vld [vmem:[#allocation22_spill] sm:$0xff] }
 0x136   : > { %v970_v2 = vadd.f32 %v962_v31, %v950_v62  ;;  %vm1230_vm14 = vcmp.eq.s32.totalorder %v1222_v47, 1  ;;  %v1113_v6 = vadd.f32 %v1105_v60, %v1037_v51  ;;  %vm1229_vm11 = vcmp.eq.s32.totalorder %v1219_v42, 1  ;;  %v3480_v51 = vld [vmem:[#allocation14_spill] sm:$0xff]  ;;  %v3484_v62 = vld [vmem:[#allocation19_spill] sm:$0xff] }
 0x137   : > { %v1106_v41 = vmul.f32 %v2814_v61, %v1094_v37  ;;  %v944_v57 = vadd.f32 %v936_v3, %v876_v52  ;;  %v956_v36 = vmul.f32 %v2762_v27, %v2799_v33  ;;  %v1031_v48 = vadd.f32 %v1023_v23, %v963_v17 }
 0x138   : > { %v1174_v10 = vmul.f32 %v2774_v24, %v1162_v12  ;;  %v1038_v9 = vadd.f32 %v1030_v22, %v970_v2  ;;  %v1181_v50 = vadd.f32 %v1173_v14, %v1113_v6  ;;  %v1237_v29 = vsel %vm1229_vm11, %v2999_v34, 0.0  ;;  %v3478_v14 = vld [vmem:[#allocation12_spill] sm:$0xff] }
 0x139   : > { %v964_v43 = vadd.f32 %v956_v36, %v944_v57  ;;  %v1238_v11 = vsel %vm1230_vm14, %v805_v13, 0.0  ;;  %v1249_v16 = vmul.f32 %v2958_v45, %v1237_v29  ;;  %v3476_v44 = vrot.slane %v2827_v26, 1  ;;  %v3479_v13 = vld [vmem:[#allocation13_spill] sm:$0xff] }
 0x13a   : > { %v1114_v4 = vadd.f32 %v1106_v41, %v1038_v9  ;;  %v925_v22 = vsel %vm917_vm10, %v3477_v35, 0.0  ;;  %vm1081_vm9 = vcmp.eq.s32.totalorder %v3478_v14, 1  ;;  %vm1148_vm3 = vcmp.eq.s32.totalorder %v3479_v13, 1  ;;  %v3486_v9 = vld [vmem:[#allocation23_spill] sm:$0xff] }
 0x13b   : > { %v804_v19 = vsel %vm798_vm13, %v791_v7, %v3476_v44  ;;  %v1257_v15 = vadd.f32 %v1249_v16, %v1181_v50  ;;  %v1250_v7 = vmul.f32 %v2958_v45, %v1238_v11  ;;  %v1087_v56 = vsel %vm1079_vm5, %v3065_v63, 0.0 }
 0x13c   : > { %v857_v0 = vsel %vm849_vm7, %v804_v19, 0.0  ;;  %v1012_v34 = vsel %vm1004_vm2, %v804_v19, 0.0  ;;  %v1182_v38 = vadd.f32 %v1174_v10, %v1114_v4  ;;  %vm1147_vm13 = vcmp.eq.s32.totalorder %v3480_v51, 1 }
 0x13d   : > { %v869_v60 = vmul.f32 %v2793_v40, %v857_v0  ;;  %v1024_v8 = vmul.f32 %v2804_v18, %v1012_v34  ;;  %vm1223_vm0 = vcmp.eq.s32.totalorder %v3481_v58, 1  ;;  %v937_v37 = vmul.f32 %v2797_v46, %v925_v22 }
 0x13e   : > { %v1258_v47 = vadd.f32 %v1250_v7, %v1182_v38  ;;  %v1013_v40 = vsel %vm1005_vm12, %v3482_v54, 0.0  ;;  %v1088_v42 = vsel %vm1080_vm8, %v3477_v35, 0.0  ;;  %vm1149_vm1 = vcmp.eq.s32.totalorder %v3483_v55, 1 }
 0x13f   : > { %v877_v32 = vadd.f32 %v869_v60, %v3091_v59  ;;  %v1032_v28 = vadd.f32 %v1024_v8, %v964_v43  ;;  %v957_v63 = vmul.f32 %v2762_v27, %v2827_v26  ;;  %v1099_v59 = vmul.f32 %v2814_v61, %v1087_v56 }
 0x140   : > { %vm1224_vm15 = vcmp.eq.s32.totalorder %v3484_v62, 1  ;;  %v1089_v46 = vsel %vm1081_vm9, %v2863_v53, 0.0  ;;  %v1100_v31 = vmul.f32 %v2814_v61, %v1088_v42  ;;  %v1155_v25 = vsel %vm1147_vm13, %v2799_v33, 0.0  ;;  %v3485_v53 = vld [vmem:[#allocation20_spill] sm:$0xff]  ;;  %v1799_v33 = vld [vmem:[%s3369_s8 + $0x1] ss:$0 sm:$0xff] }
 0x141   : > { %v945_v12 = vadd.f32 %v937_v37, %v877_v32  ;;  %v1025_v49 = vmul.f32 %v2804_v18, %v1013_v40  ;;  %v1107_v52 = vadd.f32 %v1099_v59, %v1031_v48  ;;  %v1156_v27 = vsel %vm1148_vm3, %v2827_v26, 0.0 }
 0x142   : > { %v1157_v3 = vsel %vm1149_vm1, %v2822_v5, 0.0  ;;  %v1108_v17 = vadd.f32 %v1100_v31, %v1032_v28  ;;  %v1167_v23 = vmul.f32 %v2774_v24, %v1155_v25  ;;  %v1168_v2 = vmul.f32 %v2774_v24, %v1156_v27 }
 0x143   : > { %v965_v21 = vadd.f32 %v957_v63, %v945_v12  ;;  %vm1225_vm6 = vcmp.eq.s32.totalorder %v3485_v53, 1  ;;  %v1101_v18 = vmul.f32 %v2814_v61, %v1089_v46  ;;  %v1231_v41 = vsel %vm1223_vm0, %v804_v19, 0.0 }
 0x144   : > { %v1267_v26 = vadd.f32 %v1799_v33, %v2979_v1  ;;  %v1175_v5 = vadd.f32 %v1167_v23, %v1107_v52  ;;  %v1176_v57 = vadd.f32 %v1168_v2, %v1108_v17  ;;  %v1232_v36 = vsel %vm1224_vm15, %v3482_v54, 0.0 }
 0x145   : > { %v1033_v6 = vadd.f32 %v1025_v49, %v965_v21  ;;  %v1169_v10 = vmul.f32 %v2774_v24, %v1157_v3  ;;  %v1233_v50 = vsel %vm1225_vm6, %v3486_v9, 0.0  ;;  %v1243_v29 = vmul.f32 %v2958_v45, %v1231_v41 }
 0x146   : > { %v1268_v61 = vadd.f32 %v1799_v33, %v3071_v30  ;;  %v1244_v43 = vmul.f32 %v2958_v45, %v1232_v36  ;;  %v1245_v1 = vmul.f32 %v2958_v45, %v1233_v50  ;;  %v1275_v44 = vadd.f32 3.0, %v1267_v26 }
 0x147   : > { %v1109_v48 = vadd.f32 %v1101_v18, %v1033_v6  ;;  %v1251_v16 = vadd.f32 %v1243_v29, %v1175_v5  ;;  %v1269_v19 = vadd.f32 %v1799_v33, %v3140_v39  ;;  %v1270_v24 = vadd.f32 %v1799_v33, %v1257_v15 }
 0x148   : > { %v1252_v4 = vadd.f32 %v1244_v43, %v1176_v57  ;;  %v1276_v22 = vadd.f32 3.0, %v1268_v61  ;;  %v1283_v60 = vmax.f32 %v1275_v44, 0.0  ;;  %v1271_v30 = vadd.f32 %v1799_v33, %v1258_v47 }
 0x149   : > { %v1177_v11 = vadd.f32 %v1169_v10, %v1109_v48  ;;  %v1264_v35 = vadd.f32 %v1799_v33, %v1251_v16  ;;  %v1277_v38 = vadd.f32 3.0, %v1269_v19  ;;  %v1278_v45 = vadd.f32 3.0, %v1270_v24 }
 0x14a   : > { %v1265_v34 = vadd.f32 %v1799_v33, %v1252_v4  ;;  %v1284_v51 = vmax.f32 %v1276_v22, 0.0  ;;  %v1291_v39 = vmin.f32 %v1283_v60, 6.0  ;;  %v1279_v40 = vadd.f32 3.0, %v1271_v30  ;;  %v1418_v22 = vld [vmem:[%s3367_s6 + $0x18] sm:$0xff] }
 0x14b   : > { %v1253_v0 = vadd.f32 %v1245_v1, %v1177_v11  ;;  %v1272_v13 = vadd.f32 3.0, %v1264_v35  ;;  %v1285_v54 = vmax.f32 %v1277_v38, 0.0  ;;  %v1286_v63 = vmax.f32 %v1278_v45, 0.0  ;;  %v1415_v11 = vld [vmem:[%s3367_s6] sm:$0xff]  ;;  %v1416_v1 = vld [vmem:[%s3367_s6 + $0x8] sm:$0xff] }
 0x14c   : > { %v1273_v7 = vadd.f32 3.0, %v1265_v34  ;;  %v1292_v55 = vmin.f32 %v1284_v51, 6.0  ;;  %v1299_v47 = vmul.f32 %v1291_v39, %v1267_v26  ;;  %v1287_v31 = vmax.f32 %v1279_v40, 0.0 }
 0x14d   : > { %v1266_v14 = vadd.f32 %v1799_v33, %v1253_v0  ;;  %v1280_v56 = vmax.f32 %v1272_v13, 0.0  ;;  %v1293_v46 = vmin.f32 %v1285_v54, 6.0  ;;  %v1294_v49 = vmin.f32 %v1286_v63, 6.0  ;;  %v1497_v54 = vld [vmem:[%s3368_s7] sm:$0xff]  ;;  %v1499_v63 = vld [vmem:[%s3368_s7 + $0x10] sm:$0xff] }
 0x14e   : > { %v1281_v58 = vmax.f32 %v1273_v7, 0.0  ;;  %v1300_v21 = vmul.f32 %v1292_v55, %v1268_v61  ;;  %v3229_v3 = vmul.f32 0.16666667, %v1299_v47  ;;  %v1295_v23 = vmin.f32 %v1287_v31, 6.0  ;;  %v1500_v55 = vld [vmem:[%s3368_s7 + $0x18] sm:$0xff]  ;;  %v1502_v31 = vld [vmem:[%s3368_s7 + $0x28] sm:$0xff] }
 0x14f   : > { %v1274_v8 = vadd.f32 3.0, %v1266_v14  ;;  %v1288_v37 = vmin.f32 %v1280_v56, 6.0  ;;  %v1301_v17 = vmul.f32 %v1293_v46, %v1269_v19  ;;  %v1302_v33 = vmul.f32 %v1294_v49, %v1270_v24 }
 0x150   : > { %v1289_v28 = vmin.f32 %v1281_v58, 6.0  ;;  %v3232_v53 = vmul.f32 0.16666667, %v1300_v21  ;;  %v1303_v41 = vmul.f32 %v1295_v23, %v1271_v30  ;;  %v2005_v44 = vpack.c.bf16 %v1416_v1, %v1415_v11  ;;  %v1419_v30 = vld [vmem:[%s3369_s8 + $0x2] sm:$0x1] }
 0x151   : > { %v1282_v32 = vmax.f32 %v1274_v8, 0.0  ;;  %v1296_v15 = vmul.f32 %v1288_v37, %v1264_v35  ;;  %v3235_v18 = vmul.f32 0.16666667, %v1301_v17  ;;  %v3238_v5 = vmul.f32 0.16666667, %v1302_v33  ;;  %v1417_v35 = vld [vmem:[%s3367_s6 + $0x10] sm:$0xff] }
 0x152   : > { %v1297_v12 = vmul.f32 %v1289_v28, %v1265_v34  ;;  %v3241_v36 = vmul.f32 0.16666667, %v1303_v41  ;;  %v3487_v4 = vmov 0.0   ;;  %vm3488_vm7 = vmmov 0   ;;  %v1343_v34 = vld [vmem:[%s3370_s9] sm:$0x1] }
 0x153   : > { %v1290_v42 = vmin.f32 %v1282_v32, 6.0  ;;  %v1304_v62 = vmul.f32 0.16666667, %v1296_v15  ;;  %v3489_v0 = vmov 0.0|0.0   ;;  %v2008_v24 = vpack.c.bf16 %v1418_v22, %v1417_v35  ;;  %v1501_v21 = vld [vmem:[%s3368_s7 + $0x20] sm:$0xff]  ;;  %v1504_v33 = vld [vmem:[%s3368_s7 + $0x38] sm:$0xff] }
 0x154   : > { %v3224_v25 = vmul.f32 0.16666667, %v1297_v12  ;;  %vm3490_vm10 = vcmask 261120   ;;  %v3491_v37 = vsub.s32 0, %v2721_v20  ;;  %v1498_v20 = vld [vmem:[%s3368_s7 + $0x8] sm:$0xff] }
 0x155   : > { %v1298_v59 = vmul.f32 %v1290_v42, %v1266_v14  ;;  %1960 = vmatprep.mubr.f32.mxu0 %v1304_v62  ;;  %vm3492_vm2 = vmmov %vm3490_vm10 }
 0x156   : > { %v1312_v27 = vadd.f32 %v3224_v25, %v1304_v62  ;;  %vm3493_vm4 = vmmov %vm3492_vm2 }
 0x157   : > { %v3226_v52 = vmul.f32 0.16666667, %v1298_v59  ;;  %vm3494_vm5 = vmmov %vm3492_vm2 }
 0x158   : > { %vm3495_vm12 = vmmov %vm3492_vm2 }
 0x159   : > { %v1313_v2 = vadd.f32 %v1312_v27, %v3226_v52  ;;  %vm3496_vm8 = vmmov %vm3492_vm2 }
 0x15a   : > { %vm3497_vm14 = vmmov %vm3492_vm2 }
 0x15b   : > { %v1314_v6 = vadd.f32 %v1313_v2, %v3229_v3  ;;  %vm3498_vm11 = vmmov %vm3492_vm2 }
 0x15c   : > { %vm3499_vm9 = vmmov %vm3492_vm2 }
 0x15d   : > { %v1315_v26 = vadd.f32 %v1314_v6, %v3232_v53  ;;  %v1503_v6 = vld [vmem:[%s3368_s7 + $0x30] sm:$0xff] }
 0x15f   : > { %v1316_v57 = vadd.f32 %v1315_v26, %v3235_v18 }
 0x161   : > { %v1317_v48 = vadd.f32 %v1316_v57, %v3238_v5 }
 0x163   : > { %v1318_v10 = vadd.f32 %v1317_v48, %v3241_v36 }
 0x165   : > { %v1319_v9 = vrot.slane %v1318_v10, 4 }
 0x167   : > { %v1320_v50 = vadd.f32 %v1319_v9, %v1318_v10  ;;  %v1506_v9 = vld [vmem:[%s3368_s7 + $0x48] sm:$0xff] }
 0x169   : > { %v1321_v29 = vrot.slane %v1320_v50, 2 }
 0x16b   : > { %v1322_v61 = vadd.f32 %v1321_v29, %v1320_v50  ;;  %v1505_v50 = vld [vmem:[%s3368_s7 + $0x40] sm:$0xff] }
 0x16d   : > { %v1323_v43 = vrot.slane %v1322_v61, 1 }
 0x16f   : > { %v1324_v16 = vadd.f32 %v1323_v43, %v1322_v61 }
 0x171   : > { %v1326_v19 = vmul.f32 0.015625, %v1324_v16  ;;  %v1508_v16 = vld [vmem:[%s3368_s7 + $0x58] sm:$0xff] }
 0x173   : > { %1915 = vmatmul.mubr.f32.vlgmr.msra.gmra.mrb[8].mxu1 %v1326_v19 }
 0x174   : > { %2006 = vmatpush3.bf16.msra.mxu1 %v2005_v44  ;;  %1925 = vmatprep.mubr.msk.f32.mxu1 %vm3488_vm7, %v3487_v4  ;;  %v1507_v44 = vld [vmem:[%s3368_s7 + $0x50] sm:$0xff] }
 0x175   : > { %2007 = vmatprep.subr.bf16.mxu1 %v3489_v0 }
 0x178   : > { %2009 = vmatpush3.bf16.msra.mxu1 %v2008_v24  ;;  %v1510_v24 = vld [vmem:[%s3368_s7 + $0x68] sm:$0xff] }
 0x246   : > { %v1410_v14 = vpop.f32.mrb[8].mxu1 }
 0x247   : > { %v1411_v13 = vadd.f32 %v1410_v14, %v1343_v34  ;;  %v1916_v60 = vpop.f32.mrb[9].mxu1  ;;  %v1509_v34 = vld [vmem:[%s3368_s7 + $0x60] sm:$0xff] }
 0x249   : > { %v1414_v38 = vmax.f32 %v1411_v13, 0.0 }
 0x24b   : > { %1926 = vmatmul.mubr.msk.f32.vlgmr.msra.gmra.mrb[10].mxu1 %vm3490_vm10, %v1414_v38 }
 0x31e   : > { %v1489_v7 = vpop.f32.mrb[10].mxu1 }
 0x31f   : > { %v1490_v8 = vadd.f32 %v1489_v7, %v1419_v30  ;;  %v1927_v56 = vpop.f32.mrb[11].mxu1  ;;  %v1512_v7 = vld [vmem:[%s3368_s7 + $0x78] sm:$0xff] }
 0x321   : > { %v1493_v51 = vadd.f32 3.0, %v1490_v8  ;;  %v1511_v8 = vld [vmem:[%s3368_s7 + $0x70] sm:$0xff] }
 0x323   : > { %v1494_v45 = vmax.f32 %v1493_v51, 0.0 }
 0x325   : > { %v1495_v58 = vmin.f32 %v1494_v45, 6.0 }
 0x327   : > { %v1496_v32 = vmul.f32 0.16666667, %v1495_v58 }
 0x329   : > { %v1516_v39 = vrot.slane %v1496_v32, %v3491_v37 }
 0x32b   : > { %1522 = vbcast.lane.b32.xlu1 %v1516_v39, 264  ;;  %1518 = vbcast.lane.b32.xlu0 %v1516_v39, 256 }
 0x32f   : > { %1530 = vbcast.lane.b32.xlu1 %v1516_v39, 280  ;;  %1526 = vbcast.lane.b32.xlu0 %v1516_v39, 272 }
 0x333   : > { %1538 = vbcast.lane.b32.xlu1 %v1516_v39, 296  ;;  %1534 = vbcast.lane.b32.xlu0 %v1516_v39, 288 }
 0x337   : > { %1546 = vbcast.lane.b32.xlu1 %v1516_v39, 312  ;;  %1542 = vbcast.lane.b32.xlu0 %v1516_v39, 304 }
 0x33b   : > { %1554 = vbcast.lane.b32.xlu1 %v1516_v39, 328  ;;  %1550 = vbcast.lane.b32.xlu0 %v1516_v39, 320 }
 0x33f   : > { %1562 = vbcast.lane.b32.xlu1 %v1516_v39, 344  ;;  %1558 = vbcast.lane.b32.xlu0 %v1516_v39, 336 }
 0x343   : > { %1570 = vbcast.lane.b32.xlu1 %v1516_v39, 360  ;;  %1566 = vbcast.lane.b32.xlu0 %v1516_v39, 352 }
 0x347   : > { %1578 = vbcast.lane.b32.xlu1 %v1516_v39, 376  ;;  %1574 = vbcast.lane.b32.xlu0 %v1516_v39, 368  ;;  %v1801_v39 = vld [vmem:[%s3371_s10] ss:$0 sm:$0xff] }
 0x39d   : > { %v1523_v40 = vpop.permute.xlu1 %1522  ;;  %v1519_v28 = vpop.permute.xlu0 %1518 }
 0x39e   : > { %v1581_v42 = vmul.f32 %v1523_v40, %v1498_v20  ;;  %v1580_v15 = vmul.f32 %v1519_v28, %v1497_v54 }
 0x3a0   : > { %v2010_v12 = vpack.c.bf16 %v1581_v42, %v1580_v15  ;;  %v2058_v15 = vld [vmem:[%s2218_s26 + $0x18] sm:$0xff] }
 0x3a1   : > { %v1531_v59 = vpop.permute.xlu1 %1530  ;;  %v1527_v62 = vpop.permute.xlu0 %1526 }
 0x3a2   : > { %v1583_v47 = vmul.f32 %v1531_v59, %v1500_v55  ;;  %v1582_v46 = vmul.f32 %v1527_v62, %v1499_v63  ;;  %2011 = vmatprep.subr.bf16.mxu0 %v2010_v12  ;;  %v2059_v63 = vld [vmem:[%s2218_s26 + $0x10] sm:$0xff] }
 0x3a3   : > { %2013 = vmatpush3.bf16.msra.mxu0 %v2010_v12 }
 0x3a4   : > { %v2014_v49 = vpack.c.bf16 %v1583_v47, %v1582_v46 }
 0x3a5   : > { %v1539_v27 = vpop.permute.xlu1 %1538  ;;  %v1535_v17 = vpop.permute.xlu0 %1534 }
 0x3a6   : > { %v1585_v23 = vmul.f32 %v1539_v27, %v1502_v31  ;;  %v1584_v2 = vmul.f32 %v1535_v17, %v1501_v21  ;;  %2015 = vmatprep.subr.bf16.mxu0 %v2014_v49  ;;  %v2060_v31 = vld [vmem:[%s2218_s26 + $0x28] sm:$0xff] }
 0x3a7   : > { %2017 = vmatpush3.bf16.msra.mxu0 %v2014_v49  ;;  %v2061_v49 = vld [vmem:[%s2218_s26 + $0x20] sm:$0xff] }
 0x3a8   : > { %v2018_v41 = vpack.c.bf16 %v1585_v23, %v1584_v2 }
 0x3a9   : > { %v1547_v26 = vpop.permute.xlu1 %1546  ;;  %v1543_v57 = vpop.permute.xlu0 %1542 }
 0x3aa   : > { %v1587_v48 = vmul.f32 %v1547_v26, %v1504_v33  ;;  %v1586_v10 = vmul.f32 %v1543_v57, %v1503_v6  ;;  %2019 = vmatprep.subr.bf16.mxu0 %v2018_v41  ;;  %v2062_v6 = vld [vmem:[%s2218_s26 + $0x38] sm:$0xff]  ;;  %v2063_v26 = vld [vmem:[%s2218_s26 + $0x30] sm:$0xff] }
 0x3ab   : > { %2021 = vmatpush3.bf16.msra.mxu0 %v2018_v41 }
 0x3ac   : > { %v2022_v29 = vpack.c.bf16 %v1587_v48, %v1586_v10 }
 0x3ad   : > { %v1555_v61 = vpop.permute.xlu1 %1554  ;;  %v1551_v43 = vpop.permute.xlu0 %1550 }
 0x3ae   : > { %v1589_v11 = vmul.f32 %v1555_v61, %v1506_v9  ;;  %v1588_v1 = vmul.f32 %v1551_v43, %v1505_v50  ;;  %2023 = vmatprep.subr.bf16.mxu0 %v2022_v29 }
 0x3af   : > { %2025 = vmatpush3.bf16.msra.mxu0 %v2022_v29 }
 0x3b0   : > { %v2026_v19 = vpack.c.bf16 %v1589_v11, %v1588_v1 }
 0x3b1   : > { %v1563_v4 = vpop.permute.xlu1 %1562  ;;  %v1559_v0 = vpop.permute.xlu0 %1558 }
 0x3b2   : > { %v1591_v35 = vmul.f32 %v1563_v4, %v1508_v16  ;;  %v1590_v22 = vmul.f32 %v1559_v0, %v1507_v44  ;;  %2027 = vmatprep.subr.bf16.mxu0 %v2026_v19 }
 0x3b3   : > { %2029 = vmatpush3.bf16.msra.mxu0 %v2026_v19 }
 0x3b4   : > { %v2030_v14 = vpack.c.bf16 %v1591_v35, %v1590_v22 }
 0x3b5   : > { %v1571_v13 = vpop.permute.xlu1 %1570  ;;  %v1567_v60 = vpop.permute.xlu0 %1566 }
 0x3b6   : > { %v1593_v38 = vmul.f32 %v1571_v13, %v1510_v24  ;;  %v1592_v30 = vmul.f32 %v1567_v60, %v1509_v34  ;;  %2031 = vmatprep.subr.bf16.mxu0 %v2030_v14 }
 0x3b7   : > { %2033 = vmatpush3.bf16.msra.mxu0 %v2030_v14 }
 0x3b8   : > { %v2034_v56 = vpack.c.bf16 %v1593_v38, %v1592_v30 }
 0x3b9   : > { %v1579_v51 = vpop.permute.xlu1 %1578  ;;  %v1575_v45 = vpop.permute.xlu0 %1574 }
 0x3ba   : > { %v1595_v58 = vmul.f32 %v1579_v51, %v1512_v7  ;;  %v1594_v32 = vmul.f32 %v1575_v45, %v1511_v8  ;;  %2035 = vmatprep.subr.bf16.mxu0 %v2034_v56 }
 0x3bb   : > { %2037 = vmatpush3.bf16.msra.mxu0 %v2034_v56 }
 0x3bc   : > { %v2038_v37 = vpack.c.bf16 %v1595_v58, %v1594_v32 }
 0x3be   : > { %2039 = vmatprep.subr.bf16.mxu0 %v2038_v37 }
 0x3bf   : > { %2041 = vmatpush3.bf16.msra.mxu0 %v2038_v37 }
 0x3c2   : > { %1961 = vmatmul.mubr.f32.vlgmr.msra.gmra.mrb[0].mxu0 %v3224_v25 }
 0x3c3   : > { %1963 = vmatprep.mubr.f32.mxu0 %v3226_v52 }
 0x3c6   : > { %1964 = vmatmul.mubr.f32.gmra.mrb[2].mxu0 %v3229_v3  ;;  %v2056_v3 = vld [vmem:[%s2218_s26 + $0x8] sm:$0xff] }
 0x3c7   : > { %1966 = vmatprep.mubr.f32.mxu0 %v3232_v53 }
 0x3ca   : > { %1967 = vmatmul.mubr.f32.gmra.mrb[4].mxu0 %v3235_v18  ;;  %v2057_v18 = vld [vmem:[%s2218_s26] sm:$0xff] }
 0x3cb   : > { %1969 = vmatprep.mubr.f32.mxu0 %v3238_v5 }
 0x3ce   : > { %1970 = vmatmul.mubr.f32.gmra.mrb[6].mxu0 %v3241_v36 }
 0x495   : > { %v1962_v20 = vpop.f32.mrb[0].mxu0 }
 0x496   : > { %v1675_v54 = vadd.f32 %v1962_v20, %v1801_v39  ;;  %v1669_v25 = vpop.f32.mrb[1].mxu0 }
 0x497   : > { %v1670_v52 = vadd.f32 %v1801_v39, %v1669_v25 }
 0x498   : > { %v1709_v53 = vadd.f32 %v2056_v3, %v1675_v54 }
 0x499   : > { %v1708_v5 = vadd.f32 %v2057_v18, %v1670_v52  ;;  %v1965_v36 = vpop.f32.mrb[2].mxu0 }
 0x49a   : > { %1717 = vst.msk [vmem:[%s3332_s30 + $0x8] sm:$0xff] %vm3492_vm2, %v1709_v53  ;;  %v1685_v40 = vadd.f32 %v1965_v36, %v1801_v39  ;;  %v1679_v28 = vpop.f32.mrb[3].mxu0 }
 0x49b   : > { %1716 = vst.msk [vmem:[%s3332_s30] sm:$0xff] %vm3493_vm4, %v1708_v5  ;;  %v1680_v42 = vadd.f32 %v1801_v39, %v1679_v28 }
 0x49c   : > { %v1711_v55 = vadd.f32 %v2058_v15, %v1685_v40 }
 0x49d   : > { %v1710_v12 = vadd.f32 %v2059_v63, %v1680_v42  ;;  %v1968_v59 = vpop.f32.mrb[4].mxu0 }
 0x49e   : > { %1719 = vst.msk [vmem:[%s3332_s30 + $0x18] sm:$0xff] %vm3494_vm5, %v1711_v55  ;;  %v1695_v62 = vadd.f32 %v1968_v59, %v1801_v39  ;;  %v1689_v47 = vpop.f32.mrb[5].mxu0 }
 0x49f   : > { %1718 = vst.msk [vmem:[%s3332_s30 + $0x10] sm:$0xff] %vm3495_vm12, %v1710_v12  ;;  %v1690_v46 = vadd.f32 %v1801_v39, %v1689_v47 }
 0x4a0   : > { %v1713_v21 = vadd.f32 %v2060_v31, %v1695_v62 }
 0x4a1   : > { %v1712_v27 = vadd.f32 %v2061_v49, %v1690_v46  ;;  %v1971_v17 = vpop.f32.mrb[6].mxu0 }
 0x4a2   : > { %1721 = vst.msk [vmem:[%s3332_s30 + $0x28] sm:$0xff] %vm3496_vm8, %v1713_v21  ;;  %v1705_v23 = vadd.f32 %v1971_v17, %v1801_v39  ;;  %v1699_v2 = vpop.f32.mrb[7].mxu0 }
 0x4a3   : > { %1720 = vst.msk [vmem:[%s3332_s30 + $0x20] sm:$0xff] %vm3497_vm14, %v1712_v27  ;;  %v1700_v33 = vadd.f32 %v1801_v39, %v1699_v2 }
 0x4a4   : > { %v1715_v41 = vadd.f32 %v2062_v6, %v1705_v23 }
 0x4a5   : > { %v1714_v57 = vadd.f32 %v2063_v26, %v1700_v33 }
 0x4a6   : > { %1723 = vst.msk [vmem:[%s3332_s30 + $0x38] sm:$0xff] %vm3498_vm11, %v1715_v41 }
 0x4a7   : > { %1722 = vst.msk [vmem:[%s3332_s30 + $0x30] sm:$0xff] %vm3499_vm9, %v1714_v57 }
 0x4a8 PF: > { %s21_s17 = sadd.s32 1, %s2070_s17  }
 0x4a9   : > { %p18_p4 = scmp.ge.s32.totalorder %s21_s17, 4  }
 0x4ab   :  { %20 = sbr.rel (!%p18_p4) target bundleno = 1 (0x1), region = 94 }

</bundles_post_ra>
